<compile_context>
chip_gen: v7x
topology: tpu7x:2x2x1
jax: 0.10.0
libtpu: 0.0.40
codegen_flags: <defaults>
</compile_context>

<pallas_src>
import jax
import jax.numpy as jnp
from jax.experimental import pallas as pl
from jax.experimental.pallas import tpu as pltpu

LAYER_DIMS = [28 * 28, 256, 256, 512, 512, 256, 128, 10]
K_PAD = 896          # 784 -> 7*128: lane-dense K for fc1
OUT_PAD = 128        # fc7 outputs padded 10 -> 128 lanes
NEG = -1e30          # padded-class bias -> exp underflows to 0 in the softmax

# per-layer output widths as seen by the kernel (fc7 padded)
OUT_DIMS = [256, 256, 512, 512, 256, 128, OUT_PAD]
B_TOTAL = sum(OUT_DIMS)  # 2048


def _mlp_kernel(x_ref, w1, w2, w3, w4, w5, w6, w7, b_ref, out_ref):
    h = x_ref[...]                                   # (TB, 896) bf16
    w_refs = (w1, w2, w3, w4, w5, w6, w7)
    off = 0
    logits = None
    for li, (w_ref, n) in enumerate(zip(w_refs, OUT_DIMS)):
        b = b_ref[:, off:off + n]                    # (1, n) f32, static slice
        off += n
        # bf16 MXU matmul, f32 accumulation; bias add on the f32 accumulator.
        acc = jnp.dot(h, w_ref[...], preferred_element_type=jnp.float32) + b
        if li < len(OUT_DIMS) - 1:
            # ReLU + cast in one step: next layer consumes bf16 directly.
            h = jnp.maximum(acc, 0.0).astype(jnp.bfloat16)
        else:
            logits = acc                             # (TB, 128) f32, pads ~ -1e30

    # numerically stable log_softmax over the lane-dense (padded) class dim;
    # padded lanes carry a -1e30 bias so exp() underflows to 0 and drops out.
    m = jnp.max(logits, axis=-1, keepdims=True)
    shifted = logits - m
    lse = jnp.log(jnp.sum(jnp.exp(shifted), axis=-1, keepdims=True))
    out_ref[...] = shifted - lse


def _resident_spec(shape):
    # constant index_map: block never changes across grid -> DMA'd once, resident
    return pl.BlockSpec(shape, lambda i: (0, 0))


def mnist_baseline_forward(x, packed, *, tile_b=256):
    """x: (B, 1, 28, 28) float. packed: (list of 7 bf16 (in,out) weights, (1,2048) f32 biases)."""
    weights, b_all = packed
    B = x.shape[0]
    x_flat = x.reshape(B, LAYER_DIMS[0]).astype(jnp.bfloat16)

    # Batch tile: 256 fills the 256x256 MXU M dimension on v6e/v7x.  When the
    # whole batch fits in one tile, split it into (up to) two tiles so the
    # "parallel" batch axis can engage the second TensorCore on v7x.
    if B > tile_b:
        tb = tile_b
    else:
        half = -(-B // 2)
        tb = max(8, ((half + 7) // 8) * 8)
    Bp = ((B + tb - 1) // tb) * tb

    # Single fused pad: batch rows -> Bp, K lanes 784 -> 896 (all in bf16).
    x_flat = jnp.pad(x_flat, ((0, Bp - B), (0, K_PAD - LAYER_DIMS[0])))
    grid = (Bp // tb,)

    in_specs = [pl.BlockSpec((tb, K_PAD), lambda i: (i, 0))]
    in_specs += [_resident_spec(w.shape) for w in weights]
    in_specs += [_resident_spec(b_all.shape)]

    vmem_limit = (16 << 20) if tb <= 256 else (32 << 20)

    out = pl.pallas_call(
        _mlp_kernel,
        out_shape=jax.ShapeDtypeStruct((Bp, OUT_PAD), jnp.float32),
        grid_spec=pltpu.PrefetchScalarGridSpec(
            num_scalar_prefetch=0,
            grid=grid,
            in_specs=in_specs,
            out_specs=pl.BlockSpec((tb, OUT_PAD), lambda i: (i, 0)),
        ),
        compiler_params=pltpu.CompilerParams(
            dimension_semantics=("parallel",),   # shards batch tiles across TCs on v7x
            vmem_limit_bytes=vmem_limit,
        ),
    )(x_flat, *weights, b_all)

    # slice off batch padding and the 118 padded class lanes
    return (out[:B, :LAYER_DIMS[-1]],)


def init_params(key):
    """nn.Linear-style init; weights stored (in, out), biases (out,), all f32."""
    params = []
    for i in range(len(LAYER_DIMS) - 1):
        fan_in, fan_out = LAYER_DIMS[i], LAYER_DIMS[i + 1]
        key, kw, kb = jax.random.split(key, 3)
        bound = 1.0 / jnp.sqrt(fan_in)
        w = jax.random.uniform(kw, (fan_in, fan_out), jnp.float32, -bound, bound)
        b = jax.random.uniform(kb, (fan_out,), jnp.float32, -bound, bound)
        params.append((w, b))
    return params


def pack_params(params):
    """Pad fc1 K and fc7 N, cast weights to bf16, concat biases into (1, 2048) f32."""
    weights, biases = [], []
    n_layers = len(params)
    for li, (w, b) in enumerate(params):
        if li == 0:
            w = jnp.pad(w, ((0, K_PAD - w.shape[0]), (0, 0)))
        if li == n_layers - 1:
            w = jnp.pad(w, ((0, 0), (0, OUT_PAD - w.shape[1])))
            b = jnp.pad(b, (0, OUT_PAD - b.shape[0]), constant_values=NEG)
        weights.append(w.astype(jnp.bfloat16))
        biases.append(b.astype(jnp.float32))
    b_all = jnp.concatenate(biases).reshape(1, B_TOTAL)
    return weights, b_all


def reference_forward(x, params):
    """Pure-JAX reference mirroring the kernel numerics (bf16 weights/activations, f32 acc)."""
    h = x.reshape(x.shape[0], -1).astype(jnp.float32)
    for li, (w, b) in enumerate(params):
        h = jnp.dot(h.astype(jnp.bfloat16), w.astype(jnp.bfloat16),
                    preferred_element_type=jnp.float32) + b
        if li < len(params) - 1:
            h = jnp.maximum(h, 0.0)
    return jax.nn.log_softmax(h, axis=-1)


if __name__ == "__main__":
    key = jax.random.PRNGKey(0)
    k_x, k_x2, k_p = jax.random.split(key, 3)

    params = init_params(k_p)
    packed = pack_params(params)

    # small batch (splits into two tiny tiles for the parallel batch axis)
    B = 8
    x = jax.random.normal(k_x, (B, 1, 28, 28), jnp.float32)
    (log_probs,) = mnist_baseline_forward(x, packed)
    log_probs = jax.block_until_ready(log_probs)
    assert log_probs.shape == (B, 10)
    row_sums = jnp.sum(jnp.exp(log_probs), axis=1)
    assert bool(jnp.all(jnp.abs(row_sums - 1.0) < 1e-3))
    ref = reference_forward(x, params)
    assert bool(jnp.max(jnp.abs(log_probs - ref)) < 5e-2)

    # larger batch: exercises multi-tile grid, fused batch/K padding, resident weights
    B2 = 200
    x2 = jax.random.normal(k_x2, (B2, 1, 28, 28), jnp.float32)
    (log_probs2,) = mnist_baseline_forward(x2, packed, tile_b=256)
    log_probs2 = jax.block_until_ready(log_probs2)
    assert log_probs2.shape == (B2, 10)
    row_sums2 = jnp.sum(jnp.exp(log_probs2), axis=1)
    assert bool(jnp.all(jnp.abs(row_sums2 - 1.0) < 1e-3))
    ref2 = reference_forward(x2, params)
    assert bool(jnp.max(jnp.abs(log_probs2 - ref2)) < 5e-2)

    print("KERNEL_OK")
</pallas_src>

<mosaic_0001>
module attributes {stable_mosaic.version = 11 : i64} {
  func.func @_mlp_kernel(%arg0: i32, %arg1: memref<8x896xbf16, #tpu.memory_space<vmem>>, %arg2: memref<896x256xbf16, #tpu.memory_space<vmem>>, %arg3: memref<256x256xbf16, #tpu.memory_space<vmem>>, %arg4: memref<256x512xbf16, #tpu.memory_space<vmem>>, %arg5: memref<512x512xbf16, #tpu.memory_space<vmem>>, %arg6: memref<512x256xbf16, #tpu.memory_space<vmem>>, %arg7: memref<256x128xbf16, #tpu.memory_space<vmem>>, %arg8: memref<128x128xbf16, #tpu.memory_space<vmem>>, %arg9: memref<1x2048xf32, #tpu.memory_space<vmem>>, %arg10: memref<8x128xf32, #tpu.memory_space<vmem>>) attributes {dimension_semantics = [#tpu.dimension_semantics<parallel>], iteration_bounds = array<i64: 1>, scalar_prefetch = 0 : i64, scratch_operands = 0 : i64, tpu.core_type = #tpu.core_type<tc>, window_params = [{transform_indices = @transform_0, window_bounds = array<i64: 8, 896>}, {pipeline_mode = #tpu.pipeline_mode<synchronous>, transform_indices = @transform_1, window_bounds = array<i64: 896, 256>}, {pipeline_mode = #tpu.pipeline_mode<synchronous>, transform_indices = @transform_2, window_bounds = array<i64: 256, 256>}, {pipeline_mode = #tpu.pipeline_mode<synchronous>, transform_indices = @transform_3, window_bounds = array<i64: 256, 512>}, {pipeline_mode = #tpu.pipeline_mode<synchronous>, transform_indices = @transform_4, window_bounds = array<i64: 512, 512>}, {pipeline_mode = #tpu.pipeline_mode<synchronous>, transform_indices = @transform_5, window_bounds = array<i64: 512, 256>}, {pipeline_mode = #tpu.pipeline_mode<synchronous>, transform_indices = @transform_6, window_bounds = array<i64: 256, 128>}, {pipeline_mode = #tpu.pipeline_mode<synchronous>, transform_indices = @transform_7, window_bounds = array<i64: 128, 128>}, {pipeline_mode = #tpu.pipeline_mode<synchronous>, transform_indices = @transform_8, window_bounds = array<i64: 1, 2048>}, {transform_indices = @transform_9, window_bounds = array<i64: 8, 128>}]} {
    %c0 = arith.constant 0 : index
    %c0_0 = arith.constant 0 : index
    %0 = vector.load %arg1[%c0, %c0_0] : memref<8x896xbf16, #tpu.memory_space<vmem>>, vector<8x896xbf16>
    %c0_1 = arith.constant 0 : index
    %c0_2 = arith.constant 0 : index
    %1 = vector.load %arg9[%c0_1, %c0_2] : memref<1x2048xf32, #tpu.memory_space<vmem>>, vector<1x256xf32>
    %c0_3 = arith.constant 0 : index
    %c0_4 = arith.constant 0 : index
    %2 = vector.load %arg2[%c0_3, %c0_4] : memref<896x256xbf16, #tpu.memory_space<vmem>>, vector<896x256xbf16>
    %cst = arith.constant dense<0.000000e+00> : vector<8x256xf32>
    %3 = tpu.matmul %0, %2, %cst {dimension_numbers = #tpu.dot_dimension_numbers<[1], [0], [0], [1], [0, 0, 1, 1], [], []>} : vector<8x896xbf16>, vector<896x256xbf16>, vector<8x256xf32> -> vector<8x256xf32>
    %4 = vector.broadcast %1 : vector<1x256xf32> to vector<8x256xf32>
    %5 = arith.addf %3, %4 : vector<8x256xf32>
    %cst_5 = arith.constant 0.000000e+00 : f32
    %6 = vector.broadcast %cst_5 : f32 to vector<8x256xf32>
    %7 = arith.maximumf %5, %6 : vector<8x256xf32>
    %8 = arith.truncf %7 : vector<8x256xf32> to vector<8x256xbf16>
    %c0_6 = arith.constant 0 : index
    %c256 = arith.constant 256 : index
    %9 = vector.load %arg9[%c0_6, %c256] : memref<1x2048xf32, #tpu.memory_space<vmem>>, vector<1x256xf32>
    %c0_7 = arith.constant 0 : index
    %c0_8 = arith.constant 0 : index
    %10 = vector.load %arg3[%c0_7, %c0_8] : memref<256x256xbf16, #tpu.memory_space<vmem>>, vector<256x256xbf16>
    %cst_9 = arith.constant dense<0.000000e+00> : vector<8x256xf32>
    %11 = tpu.matmul %8, %10, %cst_9 {dimension_numbers = #tpu.dot_dimension_numbers<[1], [0], [0], [1], [0, 0, 1, 1], [], []>} : vector<8x256xbf16>, vector<256x256xbf16>, vector<8x256xf32> -> vector<8x256xf32>
    %12 = vector.broadcast %9 : vector<1x256xf32> to vector<8x256xf32>
    %13 = arith.addf %11, %12 : vector<8x256xf32>
    %cst_10 = arith.constant 0.000000e+00 : f32
    %14 = vector.broadcast %cst_10 : f32 to vector<8x256xf32>
    %15 = arith.maximumf %13, %14 : vector<8x256xf32>
    %16 = arith.truncf %15 : vector<8x256xf32> to vector<8x256xbf16>
    %c0_11 = arith.constant 0 : index
    %c512 = arith.constant 512 : index
    %17 = vector.load %arg9[%c0_11, %c512] : memref<1x2048xf32, #tpu.memory_space<vmem>>, vector<1x512xf32>
    %c0_12 = arith.constant 0 : index
    %c0_13 = arith.constant 0 : index
    %18 = vector.load %arg4[%c0_12, %c0_13] : memref<256x512xbf16, #tpu.memory_space<vmem>>, vector<256x512xbf16>
    %cst_14 = arith.constant dense<0.000000e+00> : vector<8x512xf32>
    %19 = tpu.matmul %16, %18, %cst_14 {dimension_numbers = #tpu.dot_dimension_numbers<[1], [0], [0], [1], [0, 0, 1, 1], [], []>} : vector<8x256xbf16>, vector<256x512xbf16>, vector<8x512xf32> -> vector<8x512xf32>
    %20 = vector.broadcast %17 : vector<1x512xf32> to vector<8x512xf32>
    %21 = arith.addf %19, %20 : vector<8x512xf32>
    %cst_15 = arith.constant 0.000000e+00 : f32
    %22 = vector.broadcast %cst_15 : f32 to vector<8x512xf32>
    %23 = arith.maximumf %21, %22 : vector<8x512xf32>
    %24 = arith.truncf %23 : vector<8x512xf32> to vector<8x512xbf16>
    %c0_16 = arith.constant 0 : index
    %c1024 = arith.constant 1024 : index
    %25 = vector.load %arg9[%c0_16, %c1024] : memref<1x2048xf32, #tpu.memory_space<vmem>>, vector<1x512xf32>
    %c0_17 = arith.constant 0 : index
    %c0_18 = arith.constant 0 : index
    %26 = vector.load %arg5[%c0_17, %c0_18] : memref<512x512xbf16, #tpu.memory_space<vmem>>, vector<512x512xbf16>
    %cst_19 = arith.constant dense<0.000000e+00> : vector<8x512xf32>
    %27 = tpu.matmul %24, %26, %cst_19 {dimension_numbers = #tpu.dot_dimension_numbers<[1], [0], [0], [1], [0, 0, 1, 1], [], []>} : vector<8x512xbf16>, vector<512x512xbf16>, vector<8x512xf32> -> vector<8x512xf32>
    %28 = vector.broadcast %25 : vector<1x512xf32> to vector<8x512xf32>
    %29 = arith.addf %27, %28 : vector<8x512xf32>
    %cst_20 = arith.constant 0.000000e+00 : f32
    %30 = vector.broadcast %cst_20 : f32 to vector<8x512xf32>
    %31 = arith.maximumf %29, %30 : vector<8x512xf32>
    %32 = arith.truncf %31 : vector<8x512xf32> to vector<8x512xbf16>
    %c0_21 = arith.constant 0 : index
    %c1536 = arith.constant 1536 : index
    %33 = vector.load %arg9[%c0_21, %c1536] : memref<1x2048xf32, #tpu.memory_space<vmem>>, vector<1x256xf32>
    %c0_22 = arith.constant 0 : index
    %c0_23 = arith.constant 0 : index
    %34 = vector.load %arg6[%c0_22, %c0_23] : memref<512x256xbf16, #tpu.memory_space<vmem>>, vector<512x256xbf16>
    %cst_24 = arith.constant dense<0.000000e+00> : vector<8x256xf32>
    %35 = tpu.matmul %32, %34, %cst_24 {dimension_numbers = #tpu.dot_dimension_numbers<[1], [0], [0], [1], [0, 0, 1, 1], [], []>} : vector<8x512xbf16>, vector<512x256xbf16>, vector<8x256xf32> -> vector<8x256xf32>
    %36 = vector.broadcast %33 : vector<1x256xf32> to vector<8x256xf32>
    %37 = arith.addf %35, %36 : vector<8x256xf32>
    %cst_25 = arith.constant 0.000000e+00 : f32
    %38 = vector.broadcast %cst_25 : f32 to vector<8x256xf32>
    %39 = arith.maximumf %37, %38 : vector<8x256xf32>
    %40 = arith.truncf %39 : vector<8x256xf32> to vector<8x256xbf16>
    %c0_26 = arith.constant 0 : index
    %c1792 = arith.constant 1792 : index
    %41 = vector.load %arg9[%c0_26, %c1792] : memref<1x2048xf32, #tpu.memory_space<vmem>>, vector<1x128xf32>
    %c0_27 = arith.constant 0 : index
    %c0_28 = arith.constant 0 : index
    %42 = vector.load %arg7[%c0_27, %c0_28] : memref<256x128xbf16, #tpu.memory_space<vmem>>, vector<256x128xbf16>
    %cst_29 = arith.constant dense<0.000000e+00> : vector<8x128xf32>
    %43 = tpu.matmul %40, %42, %cst_29 {dimension_numbers = #tpu.dot_dimension_numbers<[1], [0], [0], [1], [0, 0, 1, 1], [], []>} : vector<8x256xbf16>, vector<256x128xbf16>, vector<8x128xf32> -> vector<8x128xf32>
    %44 = vector.broadcast %41 : vector<1x128xf32> to vector<8x128xf32>
    %45 = arith.addf %43, %44 : vector<8x128xf32>
    %cst_30 = arith.constant 0.000000e+00 : f32
    %46 = vector.broadcast %cst_30 : f32 to vector<8x128xf32>
    %47 = arith.maximumf %45, %46 : vector<8x128xf32>
    %48 = arith.truncf %47 : vector<8x128xf32> to vector<8x128xbf16>
    %c0_31 = arith.constant 0 : index
    %c1920 = arith.constant 1920 : index
    %49 = vector.load %arg9[%c0_31, %c1920] : memref<1x2048xf32, #tpu.memory_space<vmem>>, vector<1x128xf32>
    %c0_32 = arith.constant 0 : index
    %c0_33 = arith.constant 0 : index
    %50 = vector.load %arg8[%c0_32, %c0_33] : memref<128x128xbf16, #tpu.memory_space<vmem>>, vector<128x128xbf16>
    %cst_34 = arith.constant dense<0.000000e+00> : vector<8x128xf32>
    %51 = tpu.matmul %48, %50, %cst_34 {dimension_numbers = #tpu.dot_dimension_numbers<[1], [0], [0], [1], [0, 0, 1, 1], [], []>} : vector<8x128xbf16>, vector<128x128xbf16>, vector<8x128xf32> -> vector<8x128xf32>
    %52 = vector.broadcast %49 : vector<1x128xf32> to vector<8x128xf32>
    %53 = arith.addf %51, %52 : vector<8x128xf32>
    %cst_35 = arith.constant dense<0xFF800000> : vector<8xf32>
    %54 = vector.multi_reduction <maximumf>, %53, %cst_35 [1] : vector<8x128xf32> to vector<8xf32>
    %55 = vector.shape_cast %54 : vector<8xf32> to vector<8x1xf32>
    %56 = vector.broadcast %55 : vector<8x1xf32> to vector<8x128xf32>
    %57 = arith.subf %53, %56 : vector<8x128xf32>
    %58 = math.exp %57 : vector<8x128xf32>
    %cst_36 = arith.constant dense<0.000000e+00> : vector<8xf32>
    %59 = vector.multi_reduction <add>, %58, %cst_36 [1] : vector<8x128xf32> to vector<8xf32>
    %60 = vector.shape_cast %59 : vector<8xf32> to vector<8x1xf32>
    %61 = math.log %60 : vector<8x1xf32>
    %62 = vector.broadcast %61 : vector<8x1xf32> to vector<8x128xf32>
    %63 = arith.subf %57, %62 : vector<8x128xf32>
    %c0_37 = arith.constant 0 : index
    %c0_38 = arith.constant 0 : index
    %64 = vector.load %arg10[%c0_37, %c0_38] : memref<8x128xf32, #tpu.memory_space<vmem>>, vector<8x128xf32>
    tpu.vector_store %arg10[%c0_37, %c0_38], %63 {strides = array<i32>} : memref<8x128xf32, #tpu.memory_space<vmem>>, vector<8x128xf32>,
    return
  }
  func.func @transform_0(%arg0: i32) -> (i32, i32) {
    %c0_i32 = arith.constant 0 : i32
    %c0_i32_0 = arith.constant 0 : i32
    return %arg0, %c0_i32 : i32, i32
  }
  func.func @transform_1(%arg0: i32) -> (i32, i32) {
    %c0_i32 = arith.constant 0 : i32
    %c0_i32_0 = arith.constant 0 : i32
    %c0_i32_1 = arith.constant 0 : i32
    return %c0_i32, %c0_i32_0 : i32, i32
  }
  func.func @transform_2(%arg0: i32) -> (i32, i32) {
    %c0_i32 = arith.constant 0 : i32
    %c0_i32_0 = arith.constant 0 : i32
    %c0_i32_1 = arith.constant 0 : i32
    return %c0_i32, %c0_i32_0 : i32, i32
  }
  func.func @transform_3(%arg0: i32) -> (i32, i32) {
    %c0_i32 = arith.constant 0 : i32
    %c0_i32_0 = arith.constant 0 : i32
    %c0_i32_1 = arith.constant 0 : i32
    return %c0_i32, %c0_i32_0 : i32, i32
  }
  func.func @transform_4(%arg0: i32) -> (i32, i32) {
    %c0_i32 = arith.constant 0 : i32
    %c0_i32_0 = arith.constant 0 : i32
    %c0_i32_1 = arith.constant 0 : i32
    return %c0_i32, %c0_i32_0 : i32, i32
  }
  func.func @transform_5(%arg0: i32) -> (i32, i32) {
    %c0_i32 = arith.constant 0 : i32
    %c0_i32_0 = arith.constant 0 : i32
    %c0_i32_1 = arith.constant 0 : i32
    return %c0_i32, %c0_i32_0 : i32, i32
  }
  func.func @transform_6(%arg0: i32) -> (i32, i32) {
    %c0_i32 = arith.constant 0 : i32
    %c0_i32_0 = arith.constant 0 : i32
    %c0_i32_1 = arith.constant 0 : i32
    return %c0_i32, %c0_i32_0 : i32, i32
  }
  func.func @transform_7(%arg0: i32) -> (i32, i32) {
    %c0_i32 = arith.constant 0 : i32
    %c0_i32_0 = arith.constant 0 : i32
    %c0_i32_1 = arith.constant 0 : i32
    return %c0_i32, %c0_i32_0 : i32, i32
  }
  func.func @transform_8(%arg0: i32) -> (i32, i32) {
    %c0_i32 = arith.constant 0 : i32
    %c0_i32_0 = arith.constant 0 : i32
    %c0_i32_1 = arith.constant 0 : i32
    return %c0_i32, %c0_i32_0 : i32, i32
  }
  func.func @transform_9(%arg0: i32) -> (i32, i32) {
    %c0_i32 = arith.constant 0 : i32
    %c0_i32_0 = arith.constant 0 : i32
    return %arg0, %c0_i32 : i32, i32
  }
}

</mosaic_0001>

<bundles_post_ra>
// kernel: tpu_custom_call.1
= control target key start
LH: loop header
LB: loop body
LE: loop exit
PB: predicated region body
PF: predicated region fallthrough
CT: control target
= control target key end

     0   :  { %14 = vsyncpa [#allocation3], 0  ;;  %s5186_s0 = inlined_call_operand.hbm [shape: bf16[8,896], index: 0, kind: input, shape index: {}]   ;;  %s5187_s1 = inlined_call_operand.hbm [shape: bf16[896,256], index: 1, kind: input, shape index: {}]   ;;  %s5188_s2 = inlined_call_operand.hbm [shape: bf16[256,256], index: 2, kind: input, shape index: {}]   ;;  %s5189_s3 = inlined_call_operand.hbm [shape: bf16[256,512], index: 3, kind: input, shape index: {}]   ;;  %s5190_s4 = inlined_call_operand.hbm [shape: bf16[512,512], index: 4, kind: input, shape index: {}]   ;;  %s5191_s5 = inlined_call_operand.hbm [shape: bf16[512,256], index: 5, kind: input, shape index: {}]   ;;  %s5192_s6 = inlined_call_operand.hbm [shape: bf16[256,128], index: 6, kind: input, shape index: {}]   ;;  %s5193_s7 = inlined_call_operand.hbm [shape: bf16[128,128], index: 7, kind: input, shape index: {}]   ;;  %s5194_s8 = inlined_call_operand.vmem [shape: f32[1,2048], index: 8, kind: input, shape index: {}]   ;;  %s5195_s9 = inlined_call_operand.hbm [shape: f32[8,128], index: 9, kind: output, shape index: {}]  }
   0x1   :  { %15 = vsyncpa [#allocation6], 0 }
   0x2   :  { %16 = vsyncpa [#allocation9], 0 }
   0x3   :  { %17 = vsyncpa [#allocation12], 0 }
   0x4   :  { %18 = vsyncpa [#allocation15], 0 }
   0x5   :  { %19 = vsyncpa [#allocation4], 0  ;;  %s4908_s30 = smov [#allocation5]   ;;  %s4698_s13 = scalar_lea.hbm %s5187_s1, 14336 }
   0x6   :  { %s35_s10 = sshll.u32 %s4908_s30, 4  ;;  %p4699_p0 = scmp.ne.s32.totalorder %s5187_s1, %s4698_s13  ;;  %s36_s10 = int_to_ptr.vmem [resolvable:$true] %s35_s10 }
   0x7   :  { %p4702_p1 = scmp.lt.u32.totalorder %s4698_s13, %s5187_s1 }
   0x9   :  { %p4704_p2 = pnand %p4702_p1, %p4699_p0 }
   0xb   :  { %4707 = shalt.err (!%p4704_p2)
}
   0xc   :  { %s4708_s18 = scalar_lea.vmem %s36_s10, 14336  ;;  %p4713_p4 = scmp.lt.s32.totalorder %s36_s10, %s36_s10 }
   0xd   :  { %p4709_p3 = scmp.ne.s32.totalorder %s36_s10, %s4708_s18  ;;  %p4714_p5 = scmp.lt.s32.totalorder %s4708_s18, %s4708_s18 }
   0xf   :  { %p4715_p6 = por %p4714_p5, %p4713_p4 }
  0x11   :  { %p4716_p7 = pnand %p4715_p6, %p4709_p3 }
  0x13   :  { %4719 = shalt.err (!%p4716_p7)
}
  0x14   :  { %s4909_s19 = smov 128   ;;  %s4910_s20 = smov 8  }
  0x15   :  { %41 = dma.hbm_to_vmem [thread:$0]  %s5187_s1, 14336, %s36_s10, [#allocation6], %s4909_s19, %s4909_s19, %s4910_s20  }
  0x16   :  { %s4911_s23 = smov [#allocation8]   ;;  %s4720_s27 = scalar_lea.hbm %s5189_s3, 8192 }
  0x17   :  { %s59_s24 = sshll.u32 %s4911_s23, 4  ;;  %p4721_p8 = scmp.ne.s32.totalorder %s5189_s3, %s4720_s27  ;;  %s60_s24 = int_to_ptr.vmem [resolvable:$true] %s59_s24 }
  0x18   :  { %p4724_p9 = scmp.lt.u32.totalorder %s4720_s27, %s5189_s3 }
  0x1a   :  { %p4726_p10 = pnand %p4724_p9, %p4721_p8 }
  0x1c   :  { %4729 = shalt.err (!%p4726_p10)
}
  0x1d   :  { %s4730_s12 = scalar_lea.vmem %s60_s24, 8192  ;;  %p4735_p12 = scmp.lt.s32.totalorder %s60_s24, %s60_s24 }
  0x1e   :  { %p4731_p11 = scmp.ne.s32.totalorder %s60_s24, %s4730_s12  ;;  %p4736_p13 = scmp.lt.s32.totalorder %s4730_s12, %s4730_s12 }
  0x20   :  { %p4737_p0 = por %p4736_p13, %p4735_p12 }
  0x22   :  { %p4738_p1 = pnand %p4737_p0, %p4731_p11 }
  0x24   :  { %4741 = shalt.err (!%p4738_p1)
}
  0x25   :  { %s4912_s1 = smov 256   ;;  %s4913_s10 = smov 16  }
  0x26   :  { %65 = dma.hbm_to_vmem [thread:$0]  %s5189_s3, 8192, %s60_s24, [#allocation9], %s4912_s1, %s4912_s1, %s4913_s10  }
  0x27   :  { %s4914_s15 = smov [#allocation11]   ;;  %s4915_s17 = smov [#allocation2]  }
  0x28   :  { %s83_s16 = sshll.u32 %s4914_s15, 4  ;;  %s26_s18 = sshll.u32 %s4915_s17, 4  ;;  %s84_s16 = int_to_ptr.vmem [resolvable:$true] %s83_s16  ;;  %s27_s18 = int_to_ptr.vmem [resolvable:$true] %s26_s18 }
  0x29   :  { %s4742_s23 = scalar_lea.hbm %s5191_s5, 8192 }
  0x2a   :  { %p4743_p2 = scmp.ne.s32.totalorder %s5191_s5, %s4742_s23  ;;  %p4746_p3 = scmp.lt.u32.totalorder %s4742_s23, %s5191_s5 }
  0x2c   :  { %p4748_p4 = pnand %p4746_p3, %p4743_p2 }
  0x2e   :  { %4751 = shalt.err (!%p4748_p4)
}
  0x2f   :  { %s4752_s3 = scalar_lea.vmem %s84_s16, 8192  ;;  %p4757_p6 = scmp.lt.s32.totalorder %s84_s16, %s84_s16 }
  0x30   :  { %p4753_p5 = scmp.ne.s32.totalorder %s84_s16, %s4752_s3  ;;  %p4758_p7 = scmp.lt.s32.totalorder %s4752_s3, %s4752_s3 }
  0x32   :  { %p4759_p8 = por %p4758_p7, %p4757_p6 }
  0x34   :  { %p4760_p9 = pnand %p4759_p8, %p4753_p5 }
  0x36   :  { %4763 = shalt.err (!%p4760_p9)
}
  0x37   :  { %89 = dma.hbm_to_vmem [thread:$0]  %s5191_s5, 8192, %s84_s16, [#allocation12], %s4909_s19, %s4909_s19, %s4910_s20  }
  0x38   :  { %s4764_s12 = scalar_lea.hbm %s5186_s0, 448 }
  0x39   :  { %p4765_p10 = scmp.ne.s32.totalorder %s5186_s0, %s4764_s12  ;;  %p4768_p11 = scmp.lt.u32.totalorder %s4764_s12, %s5186_s0 }
  0x3b   :  { %p4770_p12 = pnand %p4768_p11, %p4765_p10 }
  0x3d   :  { %4773 = shalt.err (!%p4770_p12)
}
  0x3e   :  { %s4774_s21 = scalar_lea.vmem %s27_s18, 448  ;;  %p4779_p0 = scmp.lt.s32.totalorder %s27_s18, %s27_s18 }
  0x3f   :  { %p4775_p13 = scmp.ne.s32.totalorder %s27_s18, %s4774_s21  ;;  %p4780_p1 = scmp.lt.s32.totalorder %s4774_s21, %s4774_s21 }
  0x41   :  { %p4781_p2 = por %p4780_p1, %p4779_p0 }
  0x43   :  { %p4782_p3 = pnand %p4781_p2, %p4775_p13 }
  0x45   :  { %4785 = shalt.err (!%p4782_p3)
}
  0x46   :  { %29 = dma.hbm_to_vmem [thread:$0]  %s5186_s0, 448, %s27_s18, [#allocation3]  }
  0x47   :  { %s4916_s22 = smov [#allocation7]   ;;  %s4917_s25 = smov [#allocation10]  }
  0x48   :  { %s47_s23 = sshll.u32 %s4916_s22, 4  ;;  %s71_s26 = sshll.u32 %s4917_s25, 4  ;;  %s48_s23 = int_to_ptr.vmem [resolvable:$true] %s47_s23  ;;  %s5033_s26 = int_to_ptr.vmem [resolvable:$true] %s71_s26 }
  0x49   :  { %s4786_s3 = scalar_lea.hbm %s5188_s2, 4096 }
  0x4a   :  { %p4787_p4 = scmp.ne.s32.totalorder %s5188_s2, %s4786_s3  ;;  %p4790_p5 = scmp.lt.u32.totalorder %s4786_s3, %s5188_s2 }
  0x4c   :  { %p4792_p6 = pnand %p4790_p5, %p4787_p4 }
  0x4e   :  { %4795 = shalt.err (!%p4792_p6)
}
  0x4f   :  { %s4796_s0 = scalar_lea.vmem %s48_s23, 4096  ;;  %p4801_p8 = scmp.lt.s32.totalorder %s48_s23, %s48_s23 }
  0x50   :  { %p4797_p7 = scmp.ne.s32.totalorder %s48_s23, %s4796_s0  ;;  %p4802_p9 = scmp.lt.s32.totalorder %s4796_s0, %s4796_s0 }
  0x52   :  { %p4803_p10 = por %p4802_p9, %p4801_p8 }
  0x54   :  { %p4804_p11 = pnand %p4803_p10, %p4797_p7 }
  0x56   :  { %4807 = shalt.err (!%p4804_p11)
}
  0x57   :  { %53 = dma.hbm_to_vmem [thread:$0]  %s5188_s2, 4096, %s48_s23, [#allocation6], %s4909_s19, %s4909_s19, %s4910_s20  }
  0x58   :  { %s4808_s15 = scalar_lea.hbm %s5190_s4, 16384 }
  0x59   :  { %p4809_p12 = scmp.ne.s32.totalorder %s5190_s4, %s4808_s15  ;;  %p4812_p13 = scmp.lt.u32.totalorder %s4808_s15, %s5190_s4 }
  0x5b   :  { %p4814_p0 = pnand %p4812_p13, %p4809_p12 }
  0x5d   :  { %4817 = shalt.err (!%p4814_p0)
}
  0x5e   :  { %s4818_s22 = scalar_lea.vmem %s5033_s26, 16384  ;;  %p4823_p2 = scmp.lt.s32.totalorder %s5033_s26, %s5033_s26 }
  0x5f   :  { %p4819_p1 = scmp.ne.s32.totalorder %s5033_s26, %s4818_s22  ;;  %p4824_p3 = scmp.lt.s32.totalorder %s4818_s22, %s4818_s22 }
  0x61   :  { %p4825_p4 = por %p4824_p3, %p4823_p2 }
  0x63   :  { %p4826_p5 = pnand %p4825_p4, %p4819_p1 }
  0x65   :  { %4829 = shalt.err (!%p4826_p5)
}
  0x66   :  { %77 = dma.hbm_to_vmem [thread:$0]  %s5190_s4, 16384, %s5033_s26, [#allocation9], %s4912_s1, %s4912_s1, %s4913_s10  }
  0x67   :  { %s4918_s20 = smov [#allocation13]   ;;  %s4830_s28 = scalar_lea.hbm %s5192_s6, 2048 }
  0x68   :  { %s95_s23 = sshll.u32 %s4918_s20, 4  ;;  %p4831_p6 = scmp.ne.s32.totalorder %s5192_s6, %s4830_s28  ;;  %s96_s23 = int_to_ptr.vmem [resolvable:$true] %s95_s23 }
  0x69   :  { %p4834_p7 = scmp.lt.u32.totalorder %s4830_s28, %s5192_s6 }
  0x6b   :  { %p4836_p8 = pnand %p4834_p7, %p4831_p6 }
  0x6d   :  { %4839 = shalt.err (!%p4836_p8)
}
  0x6e   :  { %s4840_s11 = scalar_lea.vmem %s96_s23, 2048  ;;  %p4845_p10 = scmp.lt.s32.totalorder %s96_s23, %s96_s23 }
  0x6f   :  { %p4841_p9 = scmp.ne.s32.totalorder %s96_s23, %s4840_s11  ;;  %p4846_p11 = scmp.lt.s32.totalorder %s4840_s11, %s4840_s11 }
  0x71   :  { %p4847_p12 = por %p4846_p11, %p4845_p10 }
  0x73   :  { %p4848_p13 = pnand %p4847_p12, %p4841_p9 }
  0x75   :  { %4851 = shalt.err (!%p4848_p13)
}
  0x76   :  { %s4919_s4 = smov 64   ;;  %s4920_s1 = smov 4  }
  0x77   :  { %101 = dma.hbm_to_vmem [thread:$0]  %s5192_s6, 2048, %s96_s23, [#allocation12], %s4919_s4, %s4919_s4, %s4920_s1  }
  0x78   :  { %s4921_s0 = smov [#allocation14]   ;;  %s4852_s14 = scalar_lea.hbm %s5193_s7, 1024 }
  0x79   :  { %s107_s18 = sshll.u32 %s4921_s0, 4  ;;  %p4853_p0 = scmp.ne.s32.totalorder %s5193_s7, %s4852_s14  ;;  %s108_s18 = int_to_ptr.vmem [resolvable:$true] %s107_s18 }
  0x7a   :  { %p4856_p1 = scmp.lt.u32.totalorder %s4852_s14, %s5193_s7 }
  0x7c   :  { %p4858_p2 = pnand %p4856_p1, %p4853_p0 }
  0x7e   :  { %4861 = shalt.err (!%p4858_p2)
}
  0x7f   :  { %s4862_s16 = scalar_lea.vmem %s108_s18, 1024  ;;  %p4867_p4 = scmp.lt.s32.totalorder %s108_s18, %s108_s18 }
  0x80   :  { %p4863_p3 = scmp.ne.s32.totalorder %s108_s18, %s4862_s16  ;;  %p4868_p5 = scmp.lt.s32.totalorder %s4862_s16, %s4862_s16 }
  0x82   :  { %p4869_p6 = por %p4868_p5, %p4867_p4 }
  0x84   :  { %p4870_p7 = pnand %p4869_p6, %p4863_p3 }
  0x86   :  { %4873 = shalt.err (!%p4870_p7)
}
  0x87   :  { %113 = dma.hbm_to_vmem [thread:$0]  %s5193_s7, 1024, %s108_s18, [#allocation15], %s4919_s4, %s4919_s4, %s4920_s1  }
  0x88   :  { %4896 = dma.done.wait [#allocation3], 448  }
  0x89   :  { %4897 = vsyncadd [#allocation3], 4294966848 }
  0x8a   :  { %4898 = dma.done.wait [#allocation6], 18432  }
  0x8b   :  { %4899 = vsyncadd [#allocation6], 4294948864 }
  0x8c   :  { %4900 = dma.done.wait [#allocation9], 24576  }
  0x8d   :  { %4901 = vsyncadd [#allocation9], 4294942720 }
  0x8e   :  { %4902 = dma.done.wait [#allocation12], 10240  }
  0x8f   :  { %4903 = vsyncadd [#allocation12], 4294957056 }
  0x90   :  { %4904 = dma.done.wait [#allocation15], 1024  }
  0x91   :  { %4905 = vsyncadd [#allocation15], 4294966272  ;;  %v4063_v0 = vld [vmem:[#allocation5 + $0x4] ss:$8 sps:$4 sm:$0xff]   ;;  %v4065_v1 = vld [vmem:[#allocation5] ss:$8 sps:$4 sm:$0xff]  }
  0x92   :  { %854 = vmatprep.subr.bf16.mxu0 %v4063_v0  ;;  %v4066_v2 = vld [vmem:[#allocation5 + $0x14] ss:$8 sps:$4 sm:$0xff]   ;;  %v4068_v3 = vld [vmem:[#allocation5 + $0x10] ss:$8 sps:$4 sm:$0xff]   ;;  %v4069_v4 = vld [vmem:[#allocation5 + $0x24] ss:$8 sps:$4 sm:$0xff]  }
  0x93   :  { %855 = vmatpush1.bf16.msra.mxu0 %v4065_v1  ;;  %v4071_v5 = vld [vmem:[#allocation5 + $0x20] ss:$8 sps:$4 sm:$0xff]   ;;  %v4072_v6 = vld [vmem:[#allocation5 + $0x34] ss:$8 sps:$4 sm:$0xff]   ;;  %v4074_v7 = vld [vmem:[#allocation5 + $0x30] ss:$8 sps:$4 sm:$0xff]  }
  0x94   :  { %856 = vmatprep.subr.bf16.mxu0 %v4066_v2  ;;  %v4075_v8 = vld [vmem:[#allocation5 + $0x44] ss:$8 sps:$4 sm:$0xff]   ;;  %v4077_v9 = vld [vmem:[#allocation5 + $0x40] ss:$8 sps:$4 sm:$0xff]   ;;  %v4078_v10 = vld [vmem:[#allocation5 + $0x54] ss:$8 sps:$4 sm:$0xff]  }
  0x95   :  { %v4080_v11 = vld [vmem:[#allocation5 + $0x50] ss:$8 sps:$4 sm:$0xff]   ;;  %v4081_v12 = vld [vmem:[#allocation5 + $0x64] ss:$8 sps:$4 sm:$0xff]   ;;  %v4083_v15 = vld [vmem:[#allocation5 + $0x60] ss:$8 sps:$4 sm:$0xff]  }
  0x96   :  { %v141_v13 = vld [vmem:[#allocation2] sm:$0xff]  ;;  %v4084_v16 = vld [vmem:[#allocation5 + $0x74] ss:$8 sps:$4 sm:$0xff]   ;;  %v4086_v17 = vld [vmem:[#allocation5 + $0x70] ss:$8 sps:$4 sm:$0xff]   ;;  %vm4924_vm0 = vmmov 0  }
  0x97   :  { %857 = vmatpush1.bf16.msra.mxu0 %v4068_v3  ;;  %v3530_v14 = vcombine.high %v141_v13, %v141_v13  ;;  %v4087_v18 = vld [vmem:[#allocation5 + $0x84] ss:$8 sps:$4 sm:$0xff]   ;;  %v4089_v19 = vld [vmem:[#allocation5 + $0x80] ss:$8 sps:$4 sm:$0xff]   ;;  %v4090_v20 = vld [vmem:[#allocation5 + $0x94] ss:$8 sps:$4 sm:$0xff]   ;;  %v3529_v36 = vcombine.low %v141_v13, %v141_v13 }
  0x98   :  { %858 = vmatprep.subr.bf16.mxu0 %v4069_v4  ;;  %v4092_v21 = vld [vmem:[#allocation5 + $0x90] ss:$8 sps:$4 sm:$0xff]   ;;  %v4093_v22 = vld [vmem:[#allocation5 + $0xa4] ss:$8 sps:$4 sm:$0xff]   ;;  %v4095_v23 = vld [vmem:[#allocation5 + $0xa0] ss:$8 sps:$4 sm:$0xff]  }
  0x99   :  { %886 = vmatprep.mubr.bf16.mxu0 %v3530_v14  ;;  %v4096_v24 = vld [vmem:[#allocation5 + $0xb4] ss:$8 sps:$4 sm:$0xff]   ;;  %v4098_v25 = vld [vmem:[#allocation5 + $0xb0] ss:$8 sps:$4 sm:$0xff]   ;;  %v4099_v26 = vld [vmem:[#allocation5 + $0xc4] ss:$8 sps:$4 sm:$0xff]  }
  0x9a   :  { %v4101_v27 = vld [vmem:[#allocation5 + $0xc0] ss:$8 sps:$4 sm:$0xff]   ;;  %v4102_v28 = vld [vmem:[#allocation5 + $0xd4] ss:$8 sps:$4 sm:$0xff]   ;;  %v4104_v29 = vld [vmem:[#allocation5 + $0xd0] ss:$8 sps:$4 sm:$0xff]  }
  0x9b   :  { %859 = vmatpush1.bf16.msra.mxu0 %v4071_v5  ;;  %v4105_v30 = vld [vmem:[#allocation5 + $0xe4] ss:$8 sps:$4 sm:$0xff]   ;;  %v4107_v31 = vld [vmem:[#allocation5 + $0xe0] ss:$8 sps:$4 sm:$0xff]   ;;  %v4108_v32 = vld [vmem:[#allocation5 + $0xf4] ss:$8 sps:$4 sm:$0xff]  }
  0x9c   :  { %860 = vmatprep.subr.bf16.mxu0 %v4072_v6  ;;  %v4110_v33 = vld [vmem:[#allocation5 + $0xf0] ss:$8 sps:$4 sm:$0xff]   ;;  %v4115_v34 = vld [vmem:[#allocation5 + $0x104] ss:$8 sps:$4 sm:$0xff]   ;;  %v4113_v37 = vld [vmem:[#allocation5 + $0x100] ss:$8 sps:$4 sm:$0xff]  }
  0x9d   :  { %v5094_v35 = vld [vmem:[#allocation2 + $0x8] sm:$0xff]  ;;  %v4118_v39 = vld [vmem:[#allocation5 + $0x114] ss:$8 sps:$4 sm:$0xff]   ;;  %v4119_v42 = vld [vmem:[#allocation5 + $0x120] ss:$8 sps:$4 sm:$0xff]   ;;  %s4925_s1 = smov [#allocation16]  }
  0x9e   :  { %v3532_v38 = vcombine.high %v5094_v35, %v5094_v35  ;;  %v4116_v40 = vld [vmem:[#allocation5 + $0x110] ss:$8 sps:$4 sm:$0xff]   ;;  %v4121_v41 = vld [vmem:[#allocation5 + $0x124] ss:$8 sps:$4 sm:$0xff]   ;;  %v4124_v43 = vld [vmem:[#allocation5 + $0x134] ss:$8 sps:$4 sm:$0xff]  }
  0x9f   :  { %861 = vmatpush1.bf16.msra.mxu0 %v4074_v7  ;;  %v4122_v44 = vld [vmem:[#allocation5 + $0x130] ss:$8 sps:$4 sm:$0xff]   ;;  %v4127_v45 = vld [vmem:[#allocation5 + $0x144] ss:$8 sps:$4 sm:$0xff]   ;;  %v4125_v46 = vld [vmem:[#allocation5 + $0x140] ss:$8 sps:$4 sm:$0xff]  }
  0xa0   :  { %862 = vmatprep.subr.bf16.mxu0 %v4075_v8  ;;  %v4130_v47 = vld [vmem:[#allocation5 + $0x154] ss:$8 sps:$4 sm:$0xff]   ;;  %v4128_v48 = vld [vmem:[#allocation5 + $0x150] ss:$8 sps:$4 sm:$0xff]   ;;  %v4133_v49 = vld [vmem:[#allocation5 + $0x164] ss:$8 sps:$4 sm:$0xff]  }
  0xa1   :  { %v4131_v50 = vld [vmem:[#allocation5 + $0x160] ss:$8 sps:$4 sm:$0xff]   ;;  %v4136_v51 = vld [vmem:[#allocation5 + $0x174] ss:$8 sps:$4 sm:$0xff]   ;;  %v4134_v52 = vld [vmem:[#allocation5 + $0x170] ss:$8 sps:$4 sm:$0xff]  }
  0xa2   :  { %v4139_v53 = vld [vmem:[#allocation5 + $0x184] ss:$8 sps:$4 sm:$0xff]   ;;  %v4137_v54 = vld [vmem:[#allocation5 + $0x180] ss:$8 sps:$4 sm:$0xff]   ;;  %v4142_v55 = vld [vmem:[#allocation5 + $0x194] ss:$8 sps:$4 sm:$0xff]  }
  0xa3   :  { %863 = vmatpush1.bf16.msra.mxu0 %v4077_v9  ;;  %v4238_v56 = vld [vmem:[#allocation7 + $0x4] ss:$8 sps:$4 sm:$0xff]   ;;  %v4240_v57 = vld [vmem:[#allocation7] ss:$8 sps:$4 sm:$0xff]   ;;  %v4241_v58 = vld [vmem:[#allocation7 + $0x14] ss:$8 sps:$4 sm:$0xff]  }
  0xa4   :  { %864 = vmatprep.subr.bf16.mxu0 %v4078_v10  ;;  %v4140_v59 = vld [vmem:[#allocation5 + $0x190] ss:$8 sps:$4 sm:$0xff]   ;;  %v4145_v60 = vld [vmem:[#allocation5 + $0x1a4] ss:$8 sps:$4 sm:$0xff]   ;;  %1226 = vmatprep.subr.bf16.mxu1 %v4238_v56  ;;  %v4143_v63 = vld [vmem:[#allocation5 + $0x1a0] ss:$8 sps:$4 sm:$0xff]  }
  0xa5   :  { %1227 = vmatpush1.bf16.msra.mxu1 %v4240_v57  ;;  %v4243_v61 = vld [vmem:[#allocation7 + $0x10] ss:$8 sps:$4 sm:$0xff]   ;;  %v4244_v62 = vld [vmem:[#allocation7 + $0x24] ss:$8 sps:$4 sm:$0xff]   ;;  %v4148_v0 = vld [vmem:[#allocation5 + $0x1b4] ss:$8 sps:$4 sm:$0xff]  }
  0xa6   :  { %1228 = vmatprep.subr.bf16.mxu1 %v4241_v58  ;;  %v4246_v1 = vld [vmem:[#allocation7 + $0x20] ss:$8 sps:$4 sm:$0xff]   ;;  %v4146_v2 = vld [vmem:[#allocation5 + $0x1b0] ss:$8 sps:$4 sm:$0xff]   ;;  %v4247_v3 = vld [vmem:[#allocation7 + $0x34] ss:$8 sps:$4 sm:$0xff]  }
  0xa7   :  { %865 = vmatpush1.bf16.msra.mxu0 %v4080_v11  ;;  %v4151_v4 = vld [vmem:[#allocation5 + $0x1c4] ss:$8 sps:$4 sm:$0xff]   ;;  %v4249_v5 = vld [vmem:[#allocation7 + $0x30] ss:$8 sps:$4 sm:$0xff]   ;;  %v4149_v7 = vld [vmem:[#allocation5 + $0x1c0] ss:$8 sps:$4 sm:$0xff]  }
  0xa8   :  { %866 = vmatprep.subr.bf16.mxu0 %v4081_v12  ;;  %v4250_v6 = vld [vmem:[#allocation7 + $0x44] ss:$8 sps:$4 sm:$0xff]   ;;  %v4154_v8 = vld [vmem:[#allocation5 + $0x1d4] ss:$8 sps:$4 sm:$0xff]   ;;  %v4252_v9 = vld [vmem:[#allocation7 + $0x40] ss:$8 sps:$4 sm:$0xff]  }
  0xa9   :  { %1229 = vmatpush1.bf16.msra.mxu1 %v4243_v61  ;;  %v4253_v10 = vld [vmem:[#allocation7 + $0x54] ss:$8 sps:$4 sm:$0xff]   ;;  %v4152_v11 = vld [vmem:[#allocation5 + $0x1d0] ss:$8 sps:$4 sm:$0xff]   ;;  %v4157_v12 = vld [vmem:[#allocation5 + $0x1e4] ss:$8 sps:$4 sm:$0xff]  }
  0xaa   :  { %1230 = vmatprep.subr.bf16.mxu1 %v4244_v62  ;;  %v4255_v13 = vld [vmem:[#allocation7 + $0x50] ss:$8 sps:$4 sm:$0xff]   ;;  %v4256_v14 = vld [vmem:[#allocation7 + $0x64] ss:$8 sps:$4 sm:$0xff]   ;;  %v4193_v57 = vld [vmem:[#allocation5 + $0x2a0] ss:$8 sps:$4 sm:$0xff]  }
  0xab   :  { %867 = vmatpush1.bf16.msra.mxu0 %v4083_v15  ;;  %v4155_v15 = vld [vmem:[#allocation5 + $0x1e0] ss:$8 sps:$4 sm:$0xff]   ;;  %v4195_v56 = vld [vmem:[#allocation5 + $0x2a4] ss:$8 sps:$4 sm:$0xff]   ;;  %v4198_v58 = vld [vmem:[#allocation5 + $0x2b4] ss:$8 sps:$4 sm:$0xff]  }
  0xac   :  { %868 = vmatprep.subr.bf16.mxu0 %v4084_v16  ;;  %v4160_v16 = vld [vmem:[#allocation5 + $0x1f4] ss:$8 sps:$4 sm:$0xff]   ;;  %v4199_v61 = vld [vmem:[#allocation5 + $0x2c0] ss:$8 sps:$4 sm:$0xff]   ;;  %s3516_s10 = sshll.u32 %s4925_s1, 4  ;;  %s3517_s10 = int_to_ptr.vmem [resolvable:$true] %s3516_s10 }
  0xad   :  { %1231 = vmatpush1.bf16.msra.mxu1 %v4246_v1  ;;  %v4204_v62 = vld [vmem:[#allocation5 + $0x2d4] ss:$8 sps:$4 sm:$0xff]   ;;  %v4205_v1 = vld [vmem:[#allocation5 + $0x2e0] ss:$8 sps:$4 sm:$0xff]   ;;  %p4879_p9 = scmp.lt.s32.totalorder %s3517_s10, %s3517_s10 }
  0xae   :  { %1232 = vmatprep.subr.bf16.mxu1 %v4247_v3  ;;  %v4208_v3 = vld [vmem:[#allocation5 + $0x2f0] ss:$8 sps:$4 sm:$0xff]  }
  0xaf   :  { %869 = vmatpush1.bf16.msra.mxu0 %v4086_v17  ;;  %v4258_v17 = vld [vmem:[#allocation7 + $0x60] ss:$8 sps:$4 sm:$0xff]  }
  0xb0   :  { %870 = vmatprep.subr.bf16.mxu0 %v4087_v18  ;;  %v4259_v18 = vld [vmem:[#allocation7 + $0x74] ss:$8 sps:$4 sm:$0xff]  }
  0xb1   :  { %1233 = vmatpush1.bf16.msra.mxu1 %v4249_v5  ;;  %v4213_v5 = vld [vmem:[#allocation5 + $0x300] ss:$8 sps:$4 sm:$0xff]  }
  0xb2   :  { %1234 = vmatprep.subr.bf16.mxu1 %v4250_v6 }
  0xb3   :  { %871 = vmatpush1.bf16.msra.mxu0 %v4089_v19  ;;  %v4158_v19 = vld [vmem:[#allocation5 + $0x1f0] ss:$8 sps:$4 sm:$0xff]  }
  0xb4   :  { %872 = vmatprep.subr.bf16.mxu0 %v4090_v20  ;;  %v4165_v20 = vld [vmem:[#allocation5 + $0x204] ss:$8 sps:$4 sm:$0xff]  }
  0xb5   :  { %1235 = vmatpush1.bf16.msra.mxu1 %v4252_v9  ;;  %v4221_v9 = vld [vmem:[#allocation5 + $0x324] ss:$8 sps:$4 sm:$0xff]  }
  0xb6   :  { %1236 = vmatprep.subr.bf16.mxu1 %v4253_v10  ;;  %v4922_v10 = vmov 0  }
  0xb7   :  { %873 = vmatpush1.bf16.msra.mxu0 %v4092_v21  ;;  %v5098_v21 = vld [vmem:[#allocation2 + $0x10] sm:$0xff] }
  0xb8   :  { %874 = vmatprep.subr.bf16.mxu0 %v4093_v22  ;;  %v4261_v22 = vld [vmem:[#allocation7 + $0x70] ss:$8 sps:$4 sm:$0xff]   ;;  %v3533_v6 = vcombine.low %v5098_v21, %v5098_v21 }
  0xb9   :  { %1237 = vmatpush1.bf16.msra.mxu1 %v4255_v13  ;;  %v4222_v13 = vld [vmem:[#allocation5 + $0x330] ss:$8 sps:$4 sm:$0xff]  }
  0xba   :  { %1238 = vmatprep.subr.bf16.mxu1 %v4256_v14  ;;  %v4227_v14 = vld [vmem:[#allocation5 + $0x344] ss:$8 sps:$4 sm:$0xff]  }
  0xbb   :  { %875 = vmatpush1.bf16.msra.mxu0 %v4095_v23  ;;  %v4262_v23 = vld [vmem:[#allocation7 + $0x84] ss:$8 sps:$4 sm:$0xff]  }
  0xbc   :  { %876 = vmatprep.subr.bf16.mxu0 %v4096_v24  ;;  %v4163_v24 = vld [vmem:[#allocation5 + $0x200] ss:$8 sps:$4 sm:$0xff]  }
  0xbd   :  { %1239 = vmatpush1.bf16.msra.mxu1 %v4258_v17  ;;  %v4228_v17 = vld [vmem:[#allocation5 + $0x350] ss:$8 sps:$4 sm:$0xff]  }
  0xbe   :  { %1240 = vmatprep.subr.bf16.mxu1 %v4259_v18  ;;  %v4233_v18 = vld [vmem:[#allocation5 + $0x364] ss:$8 sps:$4 sm:$0xff]  }
  0xbf   :  { %877 = vmatpush1.bf16.msra.mxu0 %v4098_v25  ;;  %v3531_v25 = vcombine.low %v5094_v35, %v5094_v35  ;;  %v4174_v35 = vld [vmem:[#allocation5 + $0x234] ss:$8 sps:$4 sm:$0xff]  }
  0xc0   :  { %878 = vmatprep.subr.bf16.mxu0 %v4099_v26  ;;  %v4168_v26 = vld [vmem:[#allocation5 + $0x214] ss:$8 sps:$4 sm:$0xff]  }
  0xc1   :  { %1241 = vmatpush1.bf16.msra.mxu1 %v4261_v22  ;;  %v4237_v22 = vld [vmem:[#allocation2 + $0x18] ss:$0 sps:$4 sm:$0xff]  }
  0xc2   :  { %1242 = vmatprep.subr.bf16.mxu1 %v4262_v23  ;;  %v4280_v23 = vld [vmem:[#allocation7 + $0xe4] ss:$8 sps:$4 sm:$0xff]  }
  0xc3   :  { %879 = vmatpush1.bf16.msra.mxu0 %v4101_v27  ;;  %v3534_v27 = vcombine.high %v5098_v21, %v5098_v21  ;;  %v4234_v21 = vld [vmem:[#allocation5 + $0x370] ss:$8 sps:$4 sm:$0xff]  }
  0xc4   :  { %880 = vmatprep.subr.bf16.mxu0 %v4102_v28  ;;  %v4264_v28 = vld [vmem:[#allocation7 + $0x80] ss:$8 sps:$4 sm:$0xff]  }
  0xc5   :  { %1243 = vmatpush1.bf16.msra.mxu1 %v4264_v28  ;;  %v259_v28 = vlaneseq }
  0xc7   :  { %881 = vmatpush1.bf16.msra.mxu0 %v4104_v29  ;;  %v4265_v29 = vld [vmem:[#allocation7 + $0x94] ss:$8 sps:$4 sm:$0xff]  }
  0xc8   :  { %882 = vmatprep.subr.bf16.mxu0 %v4105_v30  ;;  %v4166_v30 = vld [vmem:[#allocation5 + $0x210] ss:$8 sps:$4 sm:$0xff]   ;;  %1244 = vmatprep.subr.bf16.mxu1 %v4265_v29  ;;  %v5106_v29 = vshrl.u32 %v259_v28, 7 }
  0xc9   :  { %v4427_v28 = vld [vmem:[#allocation10 + $0xe8] ss:$16 sps:$4 sm:$0xff]  }
  0xcb   :  { %883 = vmatpush1.bf16.msra.mxu0 %v4107_v31  ;;  %v4171_v31 = vld [vmem:[#allocation5 + $0x224] ss:$8 sps:$4 sm:$0xff]  }
  0xcc   :  { %884 = vmatprep.subr.bf16.mxu0 %v4108_v32  ;;  %v4267_v32 = vld [vmem:[#allocation7 + $0x90] ss:$8 sps:$4 sm:$0xff]  }
  0xcd   :  { %1245 = vmatpush1.bf16.msra.mxu1 %v4267_v32  ;;  %v5115_v32 = vsub.s32 1, %v5106_v29 }
  0xcf   :  { %885 = vmatpush1.bf16.msra.mxu0 %v4110_v33  ;;  %v4268_v33 = vld [vmem:[#allocation7 + $0xa4] ss:$8 sps:$4 sm:$0xff]  }
  0xd0   :  { %895 = vmatprep.subr.bf16.mxu0 %v4115_v34  ;;  %v4169_v34 = vld [vmem:[#allocation5 + $0x220] ss:$8 sps:$4 sm:$0xff]   ;;  %1246 = vmatprep.subr.bf16.mxu1 %v4268_v33 }
  0xd2   :  { %887 = vmatmul.mubr.bf16.vlgmr.msra.gmra.mrb[0].mxu0 %v3529_v36  ;;  %v4270_v36 = vld [vmem:[#allocation7 + $0xa0] ss:$8 sps:$4 sm:$0xff]  }
  0xd3   :  { %896 = vmatpush1.bf16.msra.mxu0 %v4113_v37  ;;  %927 = vmatprep.mubr.bf16.mxu0 %v3532_v38  ;;  %v4271_v37 = vld [vmem:[#allocation7 + $0xb4] ss:$8 sps:$4 sm:$0xff]   ;;  %v4172_v38 = vld [vmem:[#allocation5 + $0x230] ss:$8 sps:$4 sm:$0xff]  }
  0xd4   :  { %897 = vmatprep.subr.bf16.mxu0 %v4118_v39  ;;  %v4177_v39 = vld [vmem:[#allocation5 + $0x244] ss:$8 sps:$4 sm:$0xff]   ;;  %1247 = vmatpush1.bf16.msra.mxu1 %v4270_v36 }
  0xd5   :  { %1248 = vmatprep.subr.bf16.mxu1 %v4271_v37 }
  0xd7   :  { %898 = vmatpush1.bf16.msra.mxu0 %v4116_v40  ;;  %v4273_v40 = vld [vmem:[#allocation7 + $0xb0] ss:$8 sps:$4 sm:$0xff]  }
  0xd8   :  { %899 = vmatprep.subr.bf16.mxu0 %v4121_v41  ;;  %v4274_v41 = vld [vmem:[#allocation7 + $0xc4] ss:$8 sps:$4 sm:$0xff]   ;;  %1249 = vmatpush1.bf16.msra.mxu1 %v4273_v40 }
  0xd9   :  { %1250 = vmatprep.subr.bf16.mxu1 %v4274_v41 }
  0xdb   :  { %900 = vmatpush1.bf16.msra.mxu0 %v4119_v42  ;;  %v4175_v42 = vld [vmem:[#allocation5 + $0x240] ss:$8 sps:$4 sm:$0xff]  }
  0xdc   :  { %901 = vmatprep.subr.bf16.mxu0 %v4124_v43  ;;  %v4180_v43 = vld [vmem:[#allocation5 + $0x254] ss:$8 sps:$4 sm:$0xff]  }
  0xdf   :  { %902 = vmatpush1.bf16.msra.mxu0 %v4122_v44  ;;  %v4276_v44 = vld [vmem:[#allocation7 + $0xc0] ss:$8 sps:$4 sm:$0xff]  }
  0xe0   :  { %903 = vmatprep.subr.bf16.mxu0 %v4127_v45  ;;  %v4277_v45 = vld [vmem:[#allocation7 + $0xd4] ss:$8 sps:$4 sm:$0xff]   ;;  %1251 = vmatpush1.bf16.msra.mxu1 %v4276_v44  ;;  %v4286_v44 = vld [vmem:[#allocation8] ss:$16 sps:$4 sm:$0xff]  }
  0xe1   :  { %1252 = vmatprep.subr.bf16.mxu1 %v4277_v45 }
  0xe3   :  { %904 = vmatpush1.bf16.msra.mxu0 %v4125_v46  ;;  %v4178_v46 = vld [vmem:[#allocation5 + $0x250] ss:$8 sps:$4 sm:$0xff]  }
  0xe4   :  { %905 = vmatprep.subr.bf16.mxu0 %v4130_v47  ;;  %v4183_v47 = vld [vmem:[#allocation5 + $0x264] ss:$8 sps:$4 sm:$0xff]  }
  0xe7   :  { %906 = vmatpush1.bf16.msra.mxu0 %v4128_v48  ;;  %v4279_v48 = vld [vmem:[#allocation7 + $0xd0] ss:$8 sps:$4 sm:$0xff]  }
  0xe8   :  { %907 = vmatprep.subr.bf16.mxu0 %v4133_v49  ;;  %v4181_v49 = vld [vmem:[#allocation5 + $0x260] ss:$8 sps:$4 sm:$0xff]   ;;  %1253 = vmatpush1.bf16.msra.mxu1 %v4279_v48  ;;  %v4294_v48 = vld [vmem:[#allocation8 + $0x44] ss:$16 sps:$4 sm:$0xff]  }
  0xe9   :  { %1254 = vmatprep.subr.bf16.mxu1 %v4280_v23  ;;  %v4417_v23 = vld [vmem:[#allocation10 + $0xac] ss:$16 sps:$4 sm:$0xff]  }
  0xeb   :  { %908 = vmatpush1.bf16.msra.mxu0 %v4131_v50  ;;  %v4186_v50 = vld [vmem:[#allocation5 + $0x274] ss:$8 sps:$4 sm:$0xff]  }
  0xec   :  { %909 = vmatprep.subr.bf16.mxu0 %v4136_v51  ;;  %v4184_v51 = vld [vmem:[#allocation5 + $0x270] ss:$8 sps:$4 sm:$0xff]  }
  0xef   :  { %910 = vmatpush1.bf16.msra.mxu0 %v4134_v52  ;;  %v4189_v52 = vld [vmem:[#allocation5 + $0x284] ss:$8 sps:$4 sm:$0xff]  }
  0xf0   :  { %911 = vmatprep.subr.bf16.mxu0 %v4139_v53  ;;  %v4187_v53 = vld [vmem:[#allocation5 + $0x280] ss:$8 sps:$4 sm:$0xff]  }
  0xf3   :  { %912 = vmatpush1.bf16.msra.mxu0 %v4137_v54  ;;  %v4192_v54 = vld [vmem:[#allocation5 + $0x294] ss:$8 sps:$4 sm:$0xff]  }
  0xf4   :  { %913 = vmatprep.subr.bf16.mxu0 %v4142_v55  ;;  %v4190_v55 = vld [vmem:[#allocation5 + $0x290] ss:$8 sps:$4 sm:$0xff]  }
  0xf7   :  { %914 = vmatpush1.bf16.msra.mxu0 %v4140_v59  ;;  %v4196_v59 = vld [vmem:[#allocation5 + $0x2b0] ss:$8 sps:$4 sm:$0xff]  }
  0xf8   :  { %915 = vmatprep.subr.bf16.mxu0 %v4145_v60  ;;  %v4201_v60 = vld [vmem:[#allocation5 + $0x2c4] ss:$8 sps:$4 sm:$0xff]  }
  0xfb   :  { %916 = vmatpush1.bf16.msra.mxu0 %v4143_v63  ;;  %v4202_v63 = vld [vmem:[#allocation5 + $0x2d0] ss:$8 sps:$4 sm:$0xff]  }
  0xfc   :  { %917 = vmatprep.subr.bf16.mxu0 %v4148_v0  ;;  %v4207_v0 = vld [vmem:[#allocation5 + $0x2e4] ss:$8 sps:$4 sm:$0xff]  }
  0xff   :  { %918 = vmatpush1.bf16.msra.mxu0 %v4146_v2  ;;  %v4210_v2 = vld [vmem:[#allocation5 + $0x2f4] ss:$8 sps:$4 sm:$0xff]  }
 0x100   :  { %919 = vmatprep.subr.bf16.mxu0 %v4151_v4  ;;  %v4215_v4 = vld [vmem:[#allocation5 + $0x304] ss:$8 sps:$4 sm:$0xff]  }
 0x103   :  { %920 = vmatpush1.bf16.msra.mxu0 %v4149_v7  ;;  %v4218_v7 = vld [vmem:[#allocation5 + $0x314] ss:$8 sps:$4 sm:$0xff]  }
 0x104   :  { %921 = vmatprep.subr.bf16.mxu0 %v4154_v8  ;;  %v4216_v8 = vld [vmem:[#allocation5 + $0x310] ss:$8 sps:$4 sm:$0xff]  }
 0x107   :  { %922 = vmatpush1.bf16.msra.mxu0 %v4152_v11  ;;  %v4219_v11 = vld [vmem:[#allocation5 + $0x320] ss:$8 sps:$4 sm:$0xff]  }
 0x108   :  { %923 = vmatprep.subr.bf16.mxu0 %v4157_v12  ;;  %v4224_v12 = vld [vmem:[#allocation5 + $0x334] ss:$8 sps:$4 sm:$0xff]  }
 0x10b   :  { %924 = vmatpush1.bf16.msra.mxu0 %v4155_v15  ;;  %v4225_v15 = vld [vmem:[#allocation5 + $0x340] ss:$8 sps:$4 sm:$0xff]  }
 0x10c   :  { %925 = vmatprep.subr.bf16.mxu0 %v4160_v16  ;;  %v4230_v16 = vld [vmem:[#allocation5 + $0x354] ss:$8 sps:$4 sm:$0xff]  }
 0x10f   :  { %926 = vmatpush1.bf16.msra.mxu0 %v4158_v19  ;;  %v4231_v19 = vld [vmem:[#allocation5 + $0x360] ss:$8 sps:$4 sm:$0xff]  }
 0x110   :  { %936 = vmatprep.subr.bf16.mxu0 %v4165_v20  ;;  %v4236_v20 = vld [vmem:[#allocation5 + $0x374] ss:$8 sps:$4 sm:$0xff]  }
 0x112   :  { %928 = vmatmul.mubr.bf16.vlgmr.msra.gmra.mrb[0].mxu0 %v3531_v25  ;;  %v4283_v25 = vld [vmem:[#allocation7 + $0xf4] ss:$8 sps:$4 sm:$0xff]  }
 0x113   :  { %937 = vmatpush1.bf16.msra.mxu0 %v4163_v24  ;;  %968 = vmatprep.mubr.bf16.mxu0 %v3534_v27  ;;  %v4282_v24 = vld [vmem:[#allocation7 + $0xe0] ss:$8 sps:$4 sm:$0xff]   ;;  %v4288_v27 = vld [vmem:[#allocation8 + $0x4] ss:$16 sps:$4 sm:$0xff]  }
 0x114   :  { %938 = vmatprep.subr.bf16.mxu0 %v4168_v26  ;;  %1255 = vmatpush1.bf16.msra.mxu1 %v4282_v24  ;;  %v4285_v26 = vld [vmem:[#allocation7 + $0xf0] ss:$8 sps:$4 sm:$0xff]  }
 0x115   :  { %1256 = vmatprep.subr.bf16.mxu1 %v4283_v25  ;;  %v4415_v24 = vld [vmem:[#allocation10 + $0xa8] ss:$16 sps:$4 sm:$0xff]   ;;  %v4423_v25 = vld [vmem:[#allocation10 + $0xcc] ss:$16 sps:$4 sm:$0xff]  }
 0x117   :  { %939 = vmatpush1.bf16.msra.mxu0 %v4166_v30  ;;  %v5109_v30 = vsub.s32 0, %v5106_v29 }
 0x118   :  { %940 = vmatprep.subr.bf16.mxu0 %v4171_v31  ;;  %1257 = vmatpush1.bf16.msra.mxu1 %v4285_v26  ;;  %v145_v31 = vld [vmem:[%s5194_s8] sm:$0x3]  ;;  %v4421_v26 = vld [vmem:[#allocation10 + $0xc8] ss:$16 sps:$4 sm:$0xff]  }
 0x119   :  { %1677 = vmatprep.subr.bf16.mxu1 %v4288_v27  ;;  %v262_v33 = vrot.slane %v145_v31, %v5109_v30  ;;  %v4429_v27 = vld [vmem:[#allocation10 + $0xec] ss:$16 sps:$4 sm:$0xff]  }
 0x11b   :  { %941 = vmatpush1.bf16.msra.mxu0 %v4169_v34  ;;  %v266_v34 = vrot.slane %v145_v31, %v5115_v32  ;;  %v4435_v31 = vld [vmem:[#allocation10 + $0x10c] ss:$16 sps:$4 sm:$0xff]  }
 0x11c   :  { %942 = vmatprep.subr.bf16.mxu0 %v4174_v35 }
 0x11f   :  { %943 = vmatpush1.bf16.msra.mxu0 %v4172_v38 }
 0x120   :  { %944 = vmatprep.subr.bf16.mxu0 %v4177_v39 }
 0x123   :  { %945 = vmatpush1.bf16.msra.mxu0 %v4175_v42 }
 0x124   :  { %946 = vmatprep.subr.bf16.mxu0 %v4180_v43 }
 0x127   :  { %947 = vmatpush1.bf16.msra.mxu0 %v4178_v46  ;;  %v4291_v46 = vld [vmem:[#allocation8 + $0x24] ss:$16 sps:$4 sm:$0xff]  }
 0x128   :  { %948 = vmatprep.subr.bf16.mxu0 %v4183_v47  ;;  %v4289_v47 = vld [vmem:[#allocation8 + $0x20] ss:$16 sps:$4 sm:$0xff]  }
 0x12b   :  { %949 = vmatpush1.bf16.msra.mxu0 %v4181_v49  ;;  %v4292_v49 = vld [vmem:[#allocation8 + $0x40] ss:$16 sps:$4 sm:$0xff]  }
 0x12c   :  { %950 = vmatprep.subr.bf16.mxu0 %v4186_v50  ;;  %v4297_v50 = vld [vmem:[#allocation8 + $0x64] ss:$16 sps:$4 sm:$0xff]  }
 0x12f   :  { %951 = vmatpush1.bf16.msra.mxu0 %v4184_v51  ;;  %v4295_v51 = vld [vmem:[#allocation8 + $0x60] ss:$16 sps:$4 sm:$0xff]  }
 0x130   :  { %952 = vmatprep.subr.bf16.mxu0 %v4189_v52  ;;  %v4300_v52 = vld [vmem:[#allocation8 + $0x84] ss:$16 sps:$4 sm:$0xff]  }
 0x133   :  { %953 = vmatpush1.bf16.msra.mxu0 %v4187_v53  ;;  %v4298_v53 = vld [vmem:[#allocation8 + $0x80] ss:$16 sps:$4 sm:$0xff]  }
 0x134   :  { %954 = vmatprep.subr.bf16.mxu0 %v4192_v54  ;;  %v4303_v54 = vld [vmem:[#allocation8 + $0xa4] ss:$16 sps:$4 sm:$0xff]  }
 0x137   :  { %955 = vmatpush1.bf16.msra.mxu0 %v4190_v55  ;;  %v4301_v55 = vld [vmem:[#allocation8 + $0xa0] ss:$16 sps:$4 sm:$0xff]  }
 0x138   :  { %956 = vmatprep.subr.bf16.mxu0 %v4195_v56  ;;  %v4306_v56 = vld [vmem:[#allocation8 + $0xc4] ss:$16 sps:$4 sm:$0xff]  }
 0x13b   :  { %957 = vmatpush1.bf16.msra.mxu0 %v4193_v57  ;;  %v4304_v57 = vld [vmem:[#allocation8 + $0xc0] ss:$16 sps:$4 sm:$0xff]  }
 0x13c   :  { %958 = vmatprep.subr.bf16.mxu0 %v4198_v58  ;;  %v4309_v58 = vld [vmem:[#allocation8 + $0xe4] ss:$16 sps:$4 sm:$0xff]  }
 0x13f   :  { %959 = vmatpush1.bf16.msra.mxu0 %v4196_v59  ;;  %v4307_v59 = vld [vmem:[#allocation8 + $0xe0] ss:$16 sps:$4 sm:$0xff]  }
 0x140   :  { %960 = vmatprep.subr.bf16.mxu0 %v4201_v60  ;;  %v4312_v60 = vld [vmem:[#allocation8 + $0x104] ss:$16 sps:$4 sm:$0xff]  }
 0x143   :  { %961 = vmatpush1.bf16.msra.mxu0 %v4199_v61  ;;  %v4310_v61 = vld [vmem:[#allocation8 + $0x100] ss:$16 sps:$4 sm:$0xff]  }
 0x144   :  { %962 = vmatprep.subr.bf16.mxu0 %v4204_v62  ;;  %v4315_v62 = vld [vmem:[#allocation8 + $0x124] ss:$16 sps:$4 sm:$0xff]  }
 0x147   :  { %963 = vmatpush1.bf16.msra.mxu0 %v4202_v63  ;;  %v4313_v63 = vld [vmem:[#allocation8 + $0x120] ss:$16 sps:$4 sm:$0xff]  }
 0x148   :  { %964 = vmatprep.subr.bf16.mxu0 %v4207_v0  ;;  %v4318_v0 = vld [vmem:[#allocation8 + $0x144] ss:$16 sps:$4 sm:$0xff]  }
 0x14b   :  { %965 = vmatpush1.bf16.msra.mxu0 %v4205_v1  ;;  %v4316_v1 = vld [vmem:[#allocation8 + $0x140] ss:$16 sps:$4 sm:$0xff]  }
 0x14c   :  { %966 = vmatprep.subr.bf16.mxu0 %v4210_v2  ;;  %v4321_v2 = vld [vmem:[#allocation8 + $0x164] ss:$16 sps:$4 sm:$0xff]  }
 0x14f   :  { %967 = vmatpush1.bf16.msra.mxu0 %v4208_v3  ;;  %v4319_v3 = vld [vmem:[#allocation8 + $0x160] ss:$16 sps:$4 sm:$0xff]  }
 0x150   :  { %977 = vmatprep.subr.bf16.mxu0 %v4215_v4  ;;  %v4324_v4 = vld [vmem:[#allocation8 + $0x184] ss:$16 sps:$4 sm:$0xff]  }
 0x152   :  { %969 = vmatmul.mubr.bf16.vlgmr.msra.gmra.mrb[0].mxu0 %v3533_v6  ;;  %v4327_v6 = vld [vmem:[#allocation8 + $0x1a4] ss:$16 sps:$4 sm:$0xff]  }
 0x153   :  { %978 = vmatpush1.bf16.msra.mxu0 %v4213_v5  ;;  %1009 = vmatprep.mubr.bf16.mxu0 %v4922_v10  ;;  %v4322_v5 = vld [vmem:[#allocation8 + $0x180] ss:$16 sps:$4 sm:$0xff]   ;;  %v4333_v10 = vld [vmem:[#allocation8 + $0x1e4] ss:$16 sps:$4 sm:$0xff]  }
 0x154   :  { %979 = vmatprep.subr.bf16.mxu0 %v4218_v7  ;;  %v4325_v7 = vld [vmem:[#allocation8 + $0x1a0] ss:$16 sps:$4 sm:$0xff]  }
 0x157   :  { %980 = vmatpush1.bf16.msra.mxu0 %v4216_v8  ;;  %v4330_v8 = vld [vmem:[#allocation8 + $0x1c4] ss:$16 sps:$4 sm:$0xff]  }
 0x158   :  { %981 = vmatprep.subr.bf16.mxu0 %v4221_v9  ;;  %v4328_v9 = vld [vmem:[#allocation8 + $0x1c0] ss:$16 sps:$4 sm:$0xff]  }
 0x15b   :  { %982 = vmatpush1.bf16.msra.mxu0 %v4219_v11  ;;  %v4331_v11 = vld [vmem:[#allocation8 + $0x1e0] ss:$16 sps:$4 sm:$0xff]  }
 0x15c   :  { %983 = vmatprep.subr.bf16.mxu0 %v4224_v12  ;;  %v4336_v12 = vld [vmem:[#allocation8 + $0xc] ss:$16 sps:$4 sm:$0xff]  }
 0x15f   :  { %984 = vmatpush1.bf16.msra.mxu0 %v4222_v13  ;;  %v4385_v13 = vld [vmem:[#allocation10 + $0x8] ss:$16 sps:$4 sm:$0xff]  }
 0x160   :  { %985 = vmatprep.subr.bf16.mxu0 %v4227_v14  ;;  %v4387_v14 = vld [vmem:[#allocation10 + $0xc] ss:$16 sps:$4 sm:$0xff]  }
 0x163   :  { %986 = vmatpush1.bf16.msra.mxu0 %v4225_v15  ;;  %v4393_v15 = vld [vmem:[#allocation10 + $0x2c] ss:$16 sps:$4 sm:$0xff]  }
 0x164   :  { %987 = vmatprep.subr.bf16.mxu0 %v4230_v16  ;;  %v4391_v16 = vld [vmem:[#allocation10 + $0x28] ss:$16 sps:$4 sm:$0xff]  }
 0x167   :  { %988 = vmatpush1.bf16.msra.mxu0 %v4228_v17  ;;  %v4399_v17 = vld [vmem:[#allocation10 + $0x4c] ss:$16 sps:$4 sm:$0xff]  }
 0x168   :  { %989 = vmatprep.subr.bf16.mxu0 %v4233_v18  ;;  %v4397_v18 = vld [vmem:[#allocation10 + $0x48] ss:$16 sps:$4 sm:$0xff]  }
 0x16b   :  { %990 = vmatpush1.bf16.msra.mxu0 %v4231_v19  ;;  %v4405_v19 = vld [vmem:[#allocation10 + $0x6c] ss:$16 sps:$4 sm:$0xff]  }
 0x16c   :  { %991 = vmatprep.subr.bf16.mxu0 %v4236_v20  ;;  %v4403_v20 = vld [vmem:[#allocation10 + $0x68] ss:$16 sps:$4 sm:$0xff]  }
 0x16f   :  { %992 = vmatpush1.bf16.msra.mxu0 %v4234_v21  ;;  %v4411_v21 = vld [vmem:[#allocation10 + $0x8c] ss:$16 sps:$4 sm:$0xff]  }
 0x170   :  { %2639 = vmatprep.subr.bf16.mxu0 %v4387_v14  ;;  %v4369_v14 = vld [vmem:[#allocation8 + $0x16c] ss:$16 sps:$4 sm:$0xff]  }
 0x172   :  { %1010 = vmatmul.mubr.bf16.vlgmr.msra.gmra.mrb[0].mxu0 %v4237_v22  ;;  %v4409_v22 = vld [vmem:[#allocation10 + $0x88] ss:$16 sps:$4 sm:$0xff]  }
 0x173   :  { %2640 = vmatpush1.bf16.msra.mxu0 %v4385_v13  ;;  %v4364_v13 = vld [vmem:[#allocation8 + $0x148] ss:$16 sps:$4 sm:$0xff]  }
 0x174   :  { %2641 = vmatprep.subr.bf16.mxu0 %v4393_v15  ;;  %v4367_v15 = vld [vmem:[#allocation8 + $0x168] ss:$16 sps:$4 sm:$0xff]  }
 0x177   :  { %2642 = vmatpush1.bf16.msra.mxu0 %v4391_v16  ;;  %v4372_v16 = vld [vmem:[#allocation8 + $0x18c] ss:$16 sps:$4 sm:$0xff]  }
 0x178   :  { %2643 = vmatprep.subr.bf16.mxu0 %v4399_v17  ;;  %v4370_v17 = vld [vmem:[#allocation8 + $0x188] ss:$16 sps:$4 sm:$0xff]  }
 0x17b   :  { %2644 = vmatpush1.bf16.msra.mxu0 %v4397_v18  ;;  %v4375_v18 = vld [vmem:[#allocation8 + $0x1ac] ss:$16 sps:$4 sm:$0xff]  }
 0x17c   :  { %2645 = vmatprep.subr.bf16.mxu0 %v4405_v19  ;;  %v4373_v19 = vld [vmem:[#allocation8 + $0x1a8] ss:$16 sps:$4 sm:$0xff]  }
 0x17f   :  { %2646 = vmatpush1.bf16.msra.mxu0 %v4403_v20  ;;  %v4378_v20 = vld [vmem:[#allocation8 + $0x1cc] ss:$16 sps:$4 sm:$0xff]  }
 0x180   :  { %2647 = vmatprep.subr.bf16.mxu0 %v4411_v21  ;;  %v4376_v21 = vld [vmem:[#allocation8 + $0x1c8] ss:$16 sps:$4 sm:$0xff]  }
 0x183   :  { %2648 = vmatpush1.bf16.msra.mxu0 %v4409_v22  ;;  %v4381_v22 = vld [vmem:[#allocation8 + $0x1ec] ss:$16 sps:$4 sm:$0xff]  }
 0x184   :  { %2649 = vmatprep.subr.bf16.mxu0 %v4417_v23  ;;  %v4379_v23 = vld [vmem:[#allocation8 + $0x1e8] ss:$16 sps:$4 sm:$0xff]  }
 0x187   :  { %2650 = vmatpush1.bf16.msra.mxu0 %v4415_v24  ;;  %v4384_v24 = vld [vmem:[#allocation10 + $0x4] ss:$16 sps:$4 sm:$0xff]  }
 0x188   :  { %2651 = vmatprep.subr.bf16.mxu0 %v4423_v25  ;;  %v4382_v25 = vld [vmem:[#allocation10] ss:$16 sps:$4 sm:$0xff]  }
 0x18b   :  { %2652 = vmatpush1.bf16.msra.mxu0 %v4421_v26  ;;  %v4390_v26 = vld [vmem:[#allocation10 + $0x24] ss:$16 sps:$4 sm:$0xff]  }
 0x18c   :  { %2653 = vmatprep.subr.bf16.mxu0 %v4429_v27  ;;  %v4388_v27 = vld [vmem:[#allocation10 + $0x20] ss:$16 sps:$4 sm:$0xff]  }
 0x18f   :  { %2654 = vmatpush1.bf16.msra.mxu0 %v4427_v28  ;;  %v4396_v28 = vld [vmem:[#allocation10 + $0x44] ss:$16 sps:$4 sm:$0xff]  }
 0x190   :  { %2655 = vmatprep.subr.bf16.mxu0 %v4435_v31  ;;  %v4394_v31 = vld [vmem:[#allocation10 + $0x40] ss:$16 sps:$4 sm:$0xff]  }
 0x245   :  { %v1011_v35 = vpop.f32.mrb[0].mxu0 }
 0x246   :  { %v4013_v36 = vadd.f32 %v1011_v35, %v262_v33  ;;  %v1013_v37 = vpop.f32.mrb[1].mxu0  ;;  %v4433_v33 = vld [vmem:[#allocation10 + $0x108] ss:$16 sps:$4 sm:$0xff]  }
 0x247   :  { %v4014_v38 = vadd.f32 %v1013_v37, %v266_v34  ;;  %v1015_v39 = vpop.f32.mrb[2].mxu0  ;;  %v4441_v34 = vld [vmem:[#allocation10 + $0x12c] ss:$16 sps:$4 sm:$0xff]   ;;  %2656 = vmatpush1.bf16.msra.mxu0 %v4433_v33  ;;  %v4439_v35 = vld [vmem:[#allocation10 + $0x128] ss:$16 sps:$4 sm:$0xff]  }
 0x248   :  { %v1018_v40 = vmax.f32 %v4013_v36, 0.0  ;;  %v1016_v41 = vpop.f32.mrb[3].mxu0  ;;  %2657 = vmatprep.subr.bf16.mxu0 %v4441_v34  ;;  %v4447_v36 = vld [vmem:[#allocation10 + $0x14c] ss:$16 sps:$4 sm:$0xff]   ;;  %v4445_v37 = vld [vmem:[#allocation10 + $0x148] ss:$16 sps:$4 sm:$0xff]  }
 0x249   :  { %v1019_v42 = vmax.f32 %v4014_v38, 0.0  ;;  %v4453_v38 = vld [vmem:[#allocation10 + $0x16c] ss:$16 sps:$4 sm:$0xff]   ;;  %v4451_v39 = vld [vmem:[#allocation10 + $0x168] ss:$16 sps:$4 sm:$0xff]  }
 0x24a   :  { %v1020_v45 = vpack.c.bf16 %v1018_v40, %v1018_v40  ;;  %v4459_v40 = vld [vmem:[#allocation10 + $0x18c] ss:$16 sps:$4 sm:$0xff]   ;;  %v4457_v41 = vld [vmem:[#allocation10 + $0x188] ss:$16 sps:$4 sm:$0xff]   ;;  %v4402_v33 = vld [vmem:[#allocation10 + $0x64] ss:$16 sps:$4 sm:$0xff]  }
 0x24b   :  { %v1021_v43 = vpack.c.bf16 %v1019_v42, %v1019_v42  ;;  %2658 = vmatpush1.bf16.msra.mxu0 %v4439_v35  ;;  %v1022_v42 = vld [vmem:[%s5194_s8 + $0x2] sm:$0x3]  ;;  %v4400_v34 = vld [vmem:[#allocation10 + $0x60] ss:$16 sps:$4 sm:$0xff]  }
 0x24c   :  { %2659 = vmatprep.subr.bf16.mxu0 %v4447_v36  ;;  %v4408_v35 = vld [vmem:[#allocation10 + $0x84] ss:$16 sps:$4 sm:$0xff]   ;;  %v4406_v36 = vld [vmem:[#allocation10 + $0x80] ss:$16 sps:$4 sm:$0xff]  }
 0x24d   :  { %1258 = vmatprep.mubr.bf16.mxu1 %v1021_v43  ;;  %v4465_v43 = vld [vmem:[#allocation10 + $0x1ac] ss:$16 sps:$4 sm:$0xff]  }
 0x24e   :  { %1259 = vmatmul.mubr.bf16.vlgmr.msra.gmra.mrb[0].mxu1 %v1020_v45  ;;  %v4463_v45 = vld [vmem:[#allocation10 + $0x1a8] ss:$16 sps:$4 sm:$0xff]  }
 0x24f   :  { %1678 = vmatpush1.bf16.msra.mxu1 %v4286_v44  ;;  %2660 = vmatpush1.bf16.msra.mxu0 %v4445_v37  ;;  %v1059_v44 = vrot.slane %v1022_v42, %v5109_v30  ;;  %v4414_v37 = vld [vmem:[#allocation10 + $0xa4] ss:$16 sps:$4 sm:$0xff]  }
 0x250   :  { %1679 = vmatprep.subr.bf16.mxu1 %v4291_v46  ;;  %2661 = vmatprep.subr.bf16.mxu0 %v4453_v38  ;;  %v1063_v46 = vrot.slane %v1022_v42, %v5115_v32  ;;  %v4412_v38 = vld [vmem:[#allocation10 + $0xa0] ss:$16 sps:$4 sm:$0xff]  }
 0x251   :  { %v4418_v42 = vld [vmem:[#allocation10 + $0xc0] ss:$16 sps:$4 sm:$0xff]  }
 0x253   :  { %1680 = vmatpush1.bf16.msra.mxu1 %v4289_v47  ;;  %2662 = vmatpush1.bf16.msra.mxu0 %v4451_v39  ;;  %v4420_v39 = vld [vmem:[#allocation10 + $0xc4] ss:$16 sps:$4 sm:$0xff]  }
 0x254   :  { %1681 = vmatprep.subr.bf16.mxu1 %v4294_v48  ;;  %2663 = vmatprep.subr.bf16.mxu0 %v4459_v40  ;;  %v4471_v40 = vld [vmem:[#allocation10 + $0x1cc] ss:$16 sps:$4 sm:$0xff]  }
 0x257   :  { %1682 = vmatpush1.bf16.msra.mxu1 %v4292_v49  ;;  %2664 = vmatpush1.bf16.msra.mxu0 %v4457_v41  ;;  %v4469_v41 = vld [vmem:[#allocation10 + $0x1c8] ss:$16 sps:$4 sm:$0xff]  }
 0x258   :  { %1683 = vmatprep.subr.bf16.mxu1 %v4297_v50  ;;  %2665 = vmatprep.subr.bf16.mxu0 %v4465_v43  ;;  %v4426_v43 = vld [vmem:[#allocation10 + $0xe4] ss:$16 sps:$4 sm:$0xff]  }
 0x25b   :  { %1684 = vmatpush1.bf16.msra.mxu1 %v4295_v51  ;;  %2666 = vmatpush1.bf16.msra.mxu0 %v4463_v45  ;;  %v4475_v45 = vld [vmem:[#allocation10 + $0x1e8] ss:$16 sps:$4 sm:$0xff]  }
 0x25c   :  { %1685 = vmatprep.subr.bf16.mxu1 %v4300_v52  ;;  %2667 = vmatprep.subr.bf16.mxu0 %v4471_v40  ;;  %v4519_v40 = vld [vmem:[#allocation10 + $0x2cc] ss:$16 sps:$4 sm:$0xff]  }
 0x25f   :  { %1686 = vmatpush1.bf16.msra.mxu1 %v4298_v53  ;;  %2668 = vmatpush1.bf16.msra.mxu0 %v4469_v41  ;;  %v4514_v41 = vld [vmem:[#allocation10 + $0x2c0] ss:$16 sps:$4 sm:$0xff]  }
 0x260   :  { %1687 = vmatprep.subr.bf16.mxu1 %v4303_v54 }
 0x263   :  { %1688 = vmatpush1.bf16.msra.mxu1 %v4301_v55 }
 0x264   :  { %1689 = vmatprep.subr.bf16.mxu1 %v4306_v56  ;;  %v4334_v56 = vld [vmem:[#allocation8 + $0x8] ss:$16 sps:$4 sm:$0xff]  }
 0x267   :  { %1690 = vmatpush1.bf16.msra.mxu1 %v4304_v57 }
 0x268   :  { %1691 = vmatprep.subr.bf16.mxu1 %v4309_v58  ;;  %v4339_v58 = vld [vmem:[#allocation8 + $0x2c] ss:$16 sps:$4 sm:$0xff]  }
 0x26b   :  { %1692 = vmatpush1.bf16.msra.mxu1 %v4307_v59  ;;  %v4337_v59 = vld [vmem:[#allocation8 + $0x28] ss:$16 sps:$4 sm:$0xff]  }
 0x26c   :  { %1693 = vmatprep.subr.bf16.mxu1 %v4312_v60  ;;  %v4342_v60 = vld [vmem:[#allocation8 + $0x4c] ss:$16 sps:$4 sm:$0xff]  }
 0x26f   :  { %1694 = vmatpush1.bf16.msra.mxu1 %v4310_v61  ;;  %v4340_v61 = vld [vmem:[#allocation8 + $0x48] ss:$16 sps:$4 sm:$0xff]  }
 0x270   :  { %1695 = vmatprep.subr.bf16.mxu1 %v4315_v62  ;;  %v4345_v62 = vld [vmem:[#allocation8 + $0x6c] ss:$16 sps:$4 sm:$0xff]  }
 0x273   :  { %1696 = vmatpush1.bf16.msra.mxu1 %v4313_v63  ;;  %v4343_v63 = vld [vmem:[#allocation8 + $0x68] ss:$16 sps:$4 sm:$0xff]  }
 0x274   :  { %1697 = vmatprep.subr.bf16.mxu1 %v4318_v0  ;;  %v4348_v0 = vld [vmem:[#allocation8 + $0x8c] ss:$16 sps:$4 sm:$0xff]  }
 0x277   :  { %1698 = vmatpush1.bf16.msra.mxu1 %v4316_v1  ;;  %v4346_v1 = vld [vmem:[#allocation8 + $0x88] ss:$16 sps:$4 sm:$0xff]  }
 0x278   :  { %1699 = vmatprep.subr.bf16.mxu1 %v4321_v2  ;;  %v4351_v2 = vld [vmem:[#allocation8 + $0xac] ss:$16 sps:$4 sm:$0xff]  }
 0x27b   :  { %1700 = vmatpush1.bf16.msra.mxu1 %v4319_v3  ;;  %v4349_v3 = vld [vmem:[#allocation8 + $0xa8] ss:$16 sps:$4 sm:$0xff]  }
 0x27c   :  { %1701 = vmatprep.subr.bf16.mxu1 %v4324_v4  ;;  %v4354_v4 = vld [vmem:[#allocation8 + $0xcc] ss:$16 sps:$4 sm:$0xff]  }
 0x27f   :  { %1702 = vmatpush1.bf16.msra.mxu1 %v4322_v5  ;;  %v4352_v5 = vld [vmem:[#allocation8 + $0xc8] ss:$16 sps:$4 sm:$0xff]  }
 0x280   :  { %1703 = vmatprep.subr.bf16.mxu1 %v4327_v6  ;;  %v4357_v6 = vld [vmem:[#allocation8 + $0xec] ss:$16 sps:$4 sm:$0xff]  }
 0x283   :  { %1704 = vmatpush1.bf16.msra.mxu1 %v4325_v7  ;;  %v4355_v7 = vld [vmem:[#allocation8 + $0xe8] ss:$16 sps:$4 sm:$0xff]  }
 0x284   :  { %1705 = vmatprep.subr.bf16.mxu1 %v4330_v8  ;;  %v4360_v8 = vld [vmem:[#allocation8 + $0x10c] ss:$16 sps:$4 sm:$0xff]  }
 0x287   :  { %1706 = vmatpush1.bf16.msra.mxu1 %v4328_v9  ;;  %v4358_v9 = vld [vmem:[#allocation8 + $0x108] ss:$16 sps:$4 sm:$0xff]  }
 0x288   :  { %1707 = vmatprep.subr.bf16.mxu1 %v4333_v10  ;;  %v4363_v10 = vld [vmem:[#allocation8 + $0x12c] ss:$16 sps:$4 sm:$0xff]  }
 0x28b   :  { %1708 = vmatpush1.bf16.msra.mxu1 %v4331_v11  ;;  %v4361_v11 = vld [vmem:[#allocation8 + $0x128] ss:$16 sps:$4 sm:$0xff]  }
 0x28c   :  { %1718 = vmatprep.subr.bf16.mxu1 %v4336_v12  ;;  %v4366_v12 = vld [vmem:[#allocation8 + $0x14c] ss:$16 sps:$4 sm:$0xff]  }
 0x321   :  { %v1260_v47 = vpop.f32.mrb[0].mxu1 }
 0x322   :  { %v1261_v48 = vadd.f32 %v1260_v47, %v1059_v44  ;;  %v1262_v49 = vpop.f32.mrb[1].mxu1  ;;  %v4477_v44 = vld [vmem:[#allocation10 + $0x1ec] ss:$16 sps:$4 sm:$0xff]   ;;  %v4432_v47 = vld [vmem:[#allocation10 + $0x104] ss:$16 sps:$4 sm:$0xff]  }
 0x323   :  { %v1263_v50 = vadd.f32 %v1262_v49, %v1063_v46  ;;  %v1264_v51 = vpop.f32.mrb[2].mxu1  ;;  %2669 = vmatprep.subr.bf16.mxu0 %v4477_v44  ;;  %v4424_v46 = vld [vmem:[#allocation10 + $0xe0] ss:$16 sps:$4 sm:$0xff]   ;;  %v4525_v44 = vld [vmem:[#allocation10 + $0x2ec] ss:$16 sps:$4 sm:$0xff]  }
 0x324   :  { %v1267_v52 = vmax.f32 %v1261_v48, 0.0  ;;  %v1265_v53 = vpop.f32.mrb[3].mxu1  ;;  %2670 = vmatpush1.bf16.msra.mxu0 %v4475_v45  ;;  %v4483_v48 = vld [vmem:[#allocation10 + $0x20c] ss:$16 sps:$4 sm:$0xff]   ;;  %v4430_v49 = vld [vmem:[#allocation10 + $0x100] ss:$16 sps:$4 sm:$0xff]  }
 0x325   :  { %v1268_v54 = vmax.f32 %v1263_v50, 0.0  ;;  %2680 = vmatprep.subr.bf16.mxu0 %v4483_v48  ;;  %v4438_v50 = vld [vmem:[#allocation10 + $0x124] ss:$16 sps:$4 sm:$0xff]   ;;  %v4436_v51 = vld [vmem:[#allocation10 + $0x120] ss:$16 sps:$4 sm:$0xff]  }
 0x326   :  { %v5124_v57 = vpack.c.bf16 %v1267_v52, %v1267_v52  ;;  %v4444_v52 = vld [vmem:[#allocation10 + $0x144] ss:$16 sps:$4 sm:$0xff]   ;;  %v4442_v53 = vld [vmem:[#allocation10 + $0x140] ss:$16 sps:$4 sm:$0xff]   ;;  %v4531_v48 = vld [vmem:[#allocation10 + $0x30c] ss:$16 sps:$4 sm:$0xff]  }
 0x327   :  { %v1270_v55 = vpack.c.bf16 %v1268_v54, %v1268_v54  ;;  %v4450_v54 = vld [vmem:[#allocation10 + $0x164] ss:$16 sps:$4 sm:$0xff]   ;;  %v4520_v45 = vld [vmem:[#allocation10 + $0x2e0] ss:$16 sps:$4 sm:$0xff]  }
 0x329   :  { %1709 = vmatprep.mubr.bf16.mxu1 %v1270_v55 }
 0x32a   :  { %1710 = vmatmul.mubr.bf16.vlgmr.msra.gmra.mrb[4].mxu1 %v5124_v57 }
 0x32b   :  { %1719 = vmatpush1.bf16.msra.mxu1 %v4334_v56  ;;  %1750 = vmatprep.mubr.bf16.mxu1 %v1270_v55  ;;  %v4448_v55 = vld [vmem:[#allocation10 + $0x160] ss:$16 sps:$4 sm:$0xff]   ;;  %v4456_v56 = vld [vmem:[#allocation10 + $0x184] ss:$16 sps:$4 sm:$0xff]  }
 0x32c   :  { %1720 = vmatprep.subr.bf16.mxu1 %v4339_v58  ;;  %v4462_v58 = vld [vmem:[#allocation10 + $0x1a4] ss:$16 sps:$4 sm:$0xff]  }
 0x32f   :  { %1721 = vmatpush1.bf16.msra.mxu1 %v4337_v59  ;;  %v4460_v59 = vld [vmem:[#allocation10 + $0x1a0] ss:$16 sps:$4 sm:$0xff]  }
 0x330   :  { %1722 = vmatprep.subr.bf16.mxu1 %v4342_v60  ;;  %v4468_v60 = vld [vmem:[#allocation10 + $0x1c4] ss:$16 sps:$4 sm:$0xff]  }
 0x333   :  { %1723 = vmatpush1.bf16.msra.mxu1 %v4340_v61  ;;  %v4466_v61 = vld [vmem:[#allocation10 + $0x1c0] ss:$16 sps:$4 sm:$0xff]  }
 0x334   :  { %1724 = vmatprep.subr.bf16.mxu1 %v4345_v62  ;;  %v4474_v62 = vld [vmem:[#allocation10 + $0x1e4] ss:$16 sps:$4 sm:$0xff]  }
 0x337   :  { %1725 = vmatpush1.bf16.msra.mxu1 %v4343_v63  ;;  %v4472_v63 = vld [vmem:[#allocation10 + $0x1e0] ss:$16 sps:$4 sm:$0xff]  }
 0x338   :  { %1726 = vmatprep.subr.bf16.mxu1 %v4348_v0  ;;  %v4480_v0 = vld [vmem:[#allocation10 + $0x204] ss:$16 sps:$4 sm:$0xff]  }
 0x33b   :  { %1727 = vmatpush1.bf16.msra.mxu1 %v4346_v1  ;;  %v5131_v1 = vld [vmem:[%s5194_s8 + $0x4] sm:$0xf] }
 0x33c   :  { %1728 = vmatprep.subr.bf16.mxu1 %v4351_v2  ;;  %v1340_v2 = vrot.slane %v5131_v1, %v5109_v30 }
 0x33f   :  { %1729 = vmatpush1.bf16.msra.mxu1 %v4349_v3  ;;  %v1344_v3 = vrot.slane %v5131_v1, %v5115_v32 }
 0x340   :  { %1730 = vmatprep.subr.bf16.mxu1 %v4354_v4 }
 0x343   :  { %1731 = vmatpush1.bf16.msra.mxu1 %v4352_v5 }
 0x344   :  { %1732 = vmatprep.subr.bf16.mxu1 %v4357_v6 }
 0x347   :  { %1733 = vmatpush1.bf16.msra.mxu1 %v4355_v7 }
 0x348   :  { %1734 = vmatprep.subr.bf16.mxu1 %v4360_v8 }
 0x34b   :  { %1735 = vmatpush1.bf16.msra.mxu1 %v4358_v9 }
 0x34c   :  { %1736 = vmatprep.subr.bf16.mxu1 %v4363_v10 }
 0x34f   :  { %1737 = vmatpush1.bf16.msra.mxu1 %v4361_v11 }
 0x350   :  { %1738 = vmatprep.subr.bf16.mxu1 %v4366_v12 }
 0x353   :  { %1739 = vmatpush1.bf16.msra.mxu1 %v4364_v13  ;;  %v4478_v13 = vld [vmem:[#allocation10 + $0x200] ss:$16 sps:$4 sm:$0xff]  }
 0x354   :  { %1740 = vmatprep.subr.bf16.mxu1 %v4369_v14  ;;  %v4481_v14 = vld [vmem:[#allocation10 + $0x208] ss:$16 sps:$4 sm:$0xff]  }
 0x357   :  { %1741 = vmatpush1.bf16.msra.mxu1 %v4367_v15 }
 0x358   :  { %1742 = vmatprep.subr.bf16.mxu1 %v4372_v16  ;;  %v4486_v16 = vld [vmem:[#allocation10 + $0x224] ss:$16 sps:$4 sm:$0xff]  }
 0x35b   :  { %1743 = vmatpush1.bf16.msra.mxu1 %v4370_v17  ;;  %v4489_v17 = vld [vmem:[#allocation10 + $0x22c] ss:$16 sps:$4 sm:$0xff]  }
 0x35c   :  { %1744 = vmatprep.subr.bf16.mxu1 %v4375_v18  ;;  %v4484_v18 = vld [vmem:[#allocation10 + $0x220] ss:$16 sps:$4 sm:$0xff]  }
 0x35f   :  { %1745 = vmatpush1.bf16.msra.mxu1 %v4373_v19  ;;  %v4487_v19 = vld [vmem:[#allocation10 + $0x228] ss:$16 sps:$4 sm:$0xff]  }
 0x360   :  { %1746 = vmatprep.subr.bf16.mxu1 %v4378_v20  ;;  %v4492_v20 = vld [vmem:[#allocation10 + $0x244] ss:$16 sps:$4 sm:$0xff]  }
 0x363   :  { %1747 = vmatpush1.bf16.msra.mxu1 %v4376_v21  ;;  %v4495_v21 = vld [vmem:[#allocation10 + $0x24c] ss:$16 sps:$4 sm:$0xff]  }
 0x364   :  { %1748 = vmatprep.subr.bf16.mxu1 %v4381_v22  ;;  %v4490_v22 = vld [vmem:[#allocation10 + $0x240] ss:$16 sps:$4 sm:$0xff]  }
 0x367   :  { %1749 = vmatpush1.bf16.msra.mxu1 %v4379_v23  ;;  %v4493_v23 = vld [vmem:[#allocation10 + $0x248] ss:$16 sps:$4 sm:$0xff]  }
 0x368   :  { %2557 = vmatprep.subr.bf16.mxu1 %v4384_v24  ;;  %v4498_v24 = vld [vmem:[#allocation10 + $0x264] ss:$16 sps:$4 sm:$0xff]  }
 0x36a   :  { %1751 = vmatmul.mubr.bf16.vlgmr.msra.gmra.mrb[8].mxu1 %v5124_v57  ;;  %v4454_v57 = vld [vmem:[#allocation10 + $0x180] ss:$16 sps:$4 sm:$0xff]  }
 0x36b   :  { %2558 = vmatpush1.bf16.msra.mxu1 %v4382_v25  ;;  %v4501_v25 = vld [vmem:[#allocation10 + $0x26c] ss:$16 sps:$4 sm:$0xff]  }
 0x36c   :  { %2559 = vmatprep.subr.bf16.mxu1 %v4390_v26  ;;  %v4496_v26 = vld [vmem:[#allocation10 + $0x260] ss:$16 sps:$4 sm:$0xff]  }
 0x36f   :  { %2560 = vmatpush1.bf16.msra.mxu1 %v4388_v27  ;;  %v4499_v27 = vld [vmem:[#allocation10 + $0x268] ss:$16 sps:$4 sm:$0xff]  }
 0x370   :  { %2561 = vmatprep.subr.bf16.mxu1 %v4396_v28  ;;  %v4504_v28 = vld [vmem:[#allocation10 + $0x284] ss:$16 sps:$4 sm:$0xff]  }
 0x373   :  { %2562 = vmatpush1.bf16.msra.mxu1 %v4394_v31  ;;  %v4507_v31 = vld [vmem:[#allocation10 + $0x28c] ss:$16 sps:$4 sm:$0xff]  }
 0x374   :  { %2563 = vmatprep.subr.bf16.mxu1 %v4402_v33  ;;  %v4502_v33 = vld [vmem:[#allocation10 + $0x280] ss:$16 sps:$4 sm:$0xff]  }
 0x377   :  { %2564 = vmatpush1.bf16.msra.mxu1 %v4400_v34  ;;  %v4505_v34 = vld [vmem:[#allocation10 + $0x288] ss:$16 sps:$4 sm:$0xff]  }
 0x378   :  { %2565 = vmatprep.subr.bf16.mxu1 %v4408_v35  ;;  %v4510_v35 = vld [vmem:[#allocation10 + $0x2a4] ss:$16 sps:$4 sm:$0xff]  }
 0x37b   :  { %2566 = vmatpush1.bf16.msra.mxu1 %v4406_v36  ;;  %v4513_v36 = vld [vmem:[#allocation10 + $0x2ac] ss:$16 sps:$4 sm:$0xff]  }
 0x37c   :  { %2567 = vmatprep.subr.bf16.mxu1 %v4414_v37  ;;  %v4508_v37 = vld [vmem:[#allocation10 + $0x2a0] ss:$16 sps:$4 sm:$0xff]  }
 0x37f   :  { %2568 = vmatpush1.bf16.msra.mxu1 %v4412_v38  ;;  %v4511_v38 = vld [vmem:[#allocation10 + $0x2a8] ss:$16 sps:$4 sm:$0xff]  }
 0x380   :  { %2569 = vmatprep.subr.bf16.mxu1 %v4420_v39  ;;  %v4516_v39 = vld [vmem:[#allocation10 + $0x2c4] ss:$16 sps:$4 sm:$0xff]  }
 0x383   :  { %2570 = vmatpush1.bf16.msra.mxu1 %v4418_v42  ;;  %v4517_v42 = vld [vmem:[#allocation10 + $0x2c8] ss:$16 sps:$4 sm:$0xff]  }
 0x384   :  { %2571 = vmatprep.subr.bf16.mxu1 %v4426_v43  ;;  %v4522_v43 = vld [vmem:[#allocation10 + $0x2e4] ss:$16 sps:$4 sm:$0xff]  }
 0x387   :  { %2572 = vmatpush1.bf16.msra.mxu1 %v4424_v46  ;;  %v4523_v46 = vld [vmem:[#allocation10 + $0x2e8] ss:$16 sps:$4 sm:$0xff]  }
 0x388   :  { %2573 = vmatprep.subr.bf16.mxu1 %v4432_v47  ;;  %v4528_v47 = vld [vmem:[#allocation10 + $0x304] ss:$16 sps:$4 sm:$0xff]  }
 0x38b   :  { %2574 = vmatpush1.bf16.msra.mxu1 %v4430_v49  ;;  %v4526_v49 = vld [vmem:[#allocation10 + $0x300] ss:$16 sps:$4 sm:$0xff]  }
 0x38c   :  { %2575 = vmatprep.subr.bf16.mxu1 %v4438_v50  ;;  %v4529_v50 = vld [vmem:[#allocation10 + $0x308] ss:$16 sps:$4 sm:$0xff]  }
 0x38f   :  { %2576 = vmatpush1.bf16.msra.mxu1 %v4436_v51  ;;  %v4534_v51 = vld [vmem:[#allocation10 + $0x324] ss:$16 sps:$4 sm:$0xff]  }
 0x390   :  { %2577 = vmatprep.subr.bf16.mxu1 %v4444_v52  ;;  %v4537_v52 = vld [vmem:[#allocation10 + $0x32c] ss:$16 sps:$4 sm:$0xff]  }
 0x393   :  { %2578 = vmatpush1.bf16.msra.mxu1 %v4442_v53  ;;  %v4532_v53 = vld [vmem:[#allocation10 + $0x320] ss:$16 sps:$4 sm:$0xff]  }
 0x394   :  { %2579 = vmatprep.subr.bf16.mxu1 %v4450_v54  ;;  %v4535_v54 = vld [vmem:[#allocation10 + $0x328] ss:$16 sps:$4 sm:$0xff]  }
 0x397   :  { %2580 = vmatpush1.bf16.msra.mxu1 %v4448_v55  ;;  %v4540_v55 = vld [vmem:[#allocation10 + $0x344] ss:$16 sps:$4 sm:$0xff]  }
 0x398   :  { %2581 = vmatprep.subr.bf16.mxu1 %v4456_v56  ;;  %v4543_v56 = vld [vmem:[#allocation10 + $0x34c] ss:$16 sps:$4 sm:$0xff]  }
 0x39b   :  { %2582 = vmatpush1.bf16.msra.mxu1 %v4454_v57  ;;  %v4538_v57 = vld [vmem:[#allocation10 + $0x340] ss:$16 sps:$4 sm:$0xff]  }
 0x39c   :  { %2583 = vmatprep.subr.bf16.mxu1 %v4462_v58  ;;  %v4541_v58 = vld [vmem:[#allocation10 + $0x348] ss:$16 sps:$4 sm:$0xff]  }
 0x39f   :  { %2584 = vmatpush1.bf16.msra.mxu1 %v4460_v59  ;;  %v4546_v59 = vld [vmem:[#allocation10 + $0x364] ss:$16 sps:$4 sm:$0xff]  }
 0x3a0   :  { %2585 = vmatprep.subr.bf16.mxu1 %v4468_v60  ;;  %v4549_v60 = vld [vmem:[#allocation10 + $0x36c] ss:$16 sps:$4 sm:$0xff]  }
 0x3a3   :  { %2586 = vmatpush1.bf16.msra.mxu1 %v4466_v61  ;;  %v4544_v61 = vld [vmem:[#allocation10 + $0x360] ss:$16 sps:$4 sm:$0xff]  }
 0x3a4   :  { %2587 = vmatprep.subr.bf16.mxu1 %v4474_v62  ;;  %v4547_v62 = vld [vmem:[#allocation10 + $0x368] ss:$16 sps:$4 sm:$0xff]  }
 0x3a7   :  { %2588 = vmatpush1.bf16.msra.mxu1 %v4472_v63  ;;  %v4552_v63 = vld [vmem:[#allocation10 + $0x384] ss:$16 sps:$4 sm:$0xff]  }
 0x3a8   :  { %2598 = vmatprep.subr.bf16.mxu1 %v4480_v0  ;;  %v4555_v0 = vld [vmem:[#allocation10 + $0x38c] ss:$16 sps:$4 sm:$0xff]  }
 0x3fd   :  { %v1711_v4 = vpop.f32.mrb[4].mxu1 }
 0x3fe   :  { %v1712_v5 = vadd.f32 %v1711_v4, %v1340_v2  ;;  %v1713_v6 = vpop.f32.mrb[5].mxu1  ;;  %v4550_v2 = vld [vmem:[#allocation10 + $0x380] ss:$16 sps:$4 sm:$0xff]   ;;  %v4558_v4 = vld [vmem:[#allocation10 + $0x3a4] ss:$16 sps:$4 sm:$0xff]  }
 0x3ff   :  { %v1714_v7 = vadd.f32 %v1713_v6, %v1344_v3  ;;  %v1715_v8 = vpop.f32.mrb[6].mxu1  ;;  %v4553_v3 = vld [vmem:[#allocation10 + $0x388] ss:$16 sps:$4 sm:$0xff]   ;;  %v1347_v6 = vsub.s32 2, %v5106_v29 }
 0x400   :  { %v1759_v9 = vmax.f32 %v1712_v5, 0.0  ;;  %v1716_v10 = vpop.f32.mrb[7].mxu1  ;;  %v4561_v5 = vld [vmem:[#allocation10 + $0x3ac] ss:$16 sps:$4 sm:$0xff]   ;;  %v4559_v8 = vld [vmem:[#allocation10 + $0x3a8] ss:$16 sps:$4 sm:$0xff]  }
 0x401   :  { %v1760_v11 = vmax.f32 %v1714_v7, 0.0  ;;  %v4556_v7 = vld [vmem:[#allocation10 + $0x3a0] ss:$16 sps:$4 sm:$0xff]   ;;  %v4564_v10 = vld [vmem:[#allocation10 + $0x3c4] ss:$16 sps:$4 sm:$0xff]  }
 0x402   :  { %v1763_v15 = vpack.c.bf16 %v1759_v9, %v1759_v9  ;;  %v1351_v9 = vsub.s32 3, %v5106_v29  ;;  %v4684_v29 = vld [vmem:[#allocation13 + $0x78] sm:$0xff]  }
 0x403   :  { %v1764_v12 = vpack.c.bf16 %v1760_v11, %v1760_v11  ;;  %v4567_v11 = vld [vmem:[#allocation10 + $0x3cc] ss:$16 sps:$4 sm:$0xff]  }
 0x405   :  { %2589 = vmatprep.mubr.bf16.mxu1 %v1764_v12  ;;  %2671 = vmatprep.mubr.bf16.mxu0 %v1764_v12  ;;  %v1348_v12 = vrot.slane %v5131_v1, %v1347_v6 }
 0x406   :  { %2590 = vmatmul.mubr.bf16.vlgmr.msra.gmra.mrb[12].mxu1 %v1763_v15  ;;  %2672 = vmatmul.mubr.bf16.vlgmr.msra.gmra.mrb[4].mxu0 %v1763_v15  ;;  %v4565_v15 = vld [vmem:[#allocation10 + $0x3c8] ss:$16 sps:$4 sm:$0xff]  }
 0x407   :  { %2599 = vmatpush1.bf16.msra.mxu1 %v4478_v13  ;;  %2681 = vmatpush1.bf16.msra.mxu0 %v4481_v14  ;;  %v1352_v13 = vrot.slane %v5131_v1, %v1351_v9  ;;  %v4562_v14 = vld [vmem:[#allocation10 + $0x3c0] ss:$16 sps:$4 sm:$0xff]   ;;  %v4576_v1 = vld [vmem:[#allocation11 + $0x4] ss:$8 sps:$4 sm:$0xff]  }
 0x408   :  { %2600 = vmatprep.subr.bf16.mxu1 %v4486_v16  ;;  %2682 = vmatprep.subr.bf16.mxu0 %v4489_v17  ;;  %v4570_v16 = vld [vmem:[#allocation10 + $0x3e4] ss:$16 sps:$4 sm:$0xff]   ;;  %v4573_v17 = vld [vmem:[#allocation10 + $0x3ec] ss:$16 sps:$4 sm:$0xff]  }
 0x40b   :  { %2601 = vmatpush1.bf16.msra.mxu1 %v4484_v18  ;;  %2683 = vmatpush1.bf16.msra.mxu0 %v4487_v19 }
 0x40c   :  { %2602 = vmatprep.subr.bf16.mxu1 %v4492_v20  ;;  %2684 = vmatprep.subr.bf16.mxu0 %v4495_v21 }
 0x40f   :  { %2603 = vmatpush1.bf16.msra.mxu1 %v4490_v22  ;;  %2685 = vmatpush1.bf16.msra.mxu0 %v4493_v23  ;;  %v4568_v23 = vld [vmem:[#allocation10 + $0x3e0] ss:$16 sps:$4 sm:$0xff]  }
 0x410   :  { %2604 = vmatprep.subr.bf16.mxu1 %v4498_v24  ;;  %2686 = vmatprep.subr.bf16.mxu0 %v4501_v25  ;;  %v4571_v24 = vld [vmem:[#allocation10 + $0x3e8] ss:$16 sps:$4 sm:$0xff]  }
 0x413   :  { %2605 = vmatpush1.bf16.msra.mxu1 %v4496_v26  ;;  %2687 = vmatpush1.bf16.msra.mxu0 %v4499_v27 }
 0x414   :  { %2606 = vmatprep.subr.bf16.mxu1 %v4504_v28  ;;  %2688 = vmatprep.subr.bf16.mxu0 %v4507_v31  ;;  %v4574_v31 = vld [vmem:[#allocation11] ss:$8 sps:$4 sm:$0xff]  }
 0x417   :  { %2607 = vmatpush1.bf16.msra.mxu1 %v4502_v33  ;;  %2689 = vmatpush1.bf16.msra.mxu0 %v4505_v34  ;;  %v4579_v34 = vld [vmem:[#allocation11 + $0x14] ss:$8 sps:$4 sm:$0xff]  }
 0x418   :  { %2608 = vmatprep.subr.bf16.mxu1 %v4510_v35  ;;  %2690 = vmatprep.subr.bf16.mxu0 %v4513_v36  ;;  %v4577_v35 = vld [vmem:[#allocation11 + $0x10] ss:$8 sps:$4 sm:$0xff]   ;;  %v4582_v36 = vld [vmem:[#allocation11 + $0x24] ss:$8 sps:$4 sm:$0xff]  }
 0x41b   :  { %2609 = vmatpush1.bf16.msra.mxu1 %v4508_v37  ;;  %2691 = vmatpush1.bf16.msra.mxu0 %v4511_v38  ;;  %v4580_v37 = vld [vmem:[#allocation11 + $0x20] ss:$8 sps:$4 sm:$0xff]   ;;  %v4585_v38 = vld [vmem:[#allocation11 + $0x34] ss:$8 sps:$4 sm:$0xff]  }
 0x41c   :  { %2610 = vmatprep.subr.bf16.mxu1 %v4516_v39  ;;  %2692 = vmatprep.subr.bf16.mxu0 %v4519_v40  ;;  %v4583_v39 = vld [vmem:[#allocation11 + $0x30] ss:$8 sps:$4 sm:$0xff]   ;;  %v4588_v40 = vld [vmem:[#allocation11 + $0x44] ss:$8 sps:$4 sm:$0xff]  }
 0x41f   :  { %2611 = vmatpush1.bf16.msra.mxu1 %v4514_v41  ;;  %2693 = vmatpush1.bf16.msra.mxu0 %v4517_v42  ;;  %v4586_v41 = vld [vmem:[#allocation11 + $0x40] ss:$8 sps:$4 sm:$0xff]   ;;  %v4591_v42 = vld [vmem:[#allocation11 + $0x54] ss:$8 sps:$4 sm:$0xff]  }
 0x420   :  { %2612 = vmatprep.subr.bf16.mxu1 %v4522_v43  ;;  %2694 = vmatprep.subr.bf16.mxu0 %v4525_v44  ;;  %v4589_v43 = vld [vmem:[#allocation11 + $0x50] ss:$8 sps:$4 sm:$0xff]   ;;  %v4594_v44 = vld [vmem:[#allocation11 + $0x64] ss:$8 sps:$4 sm:$0xff]  }
 0x423   :  { %2613 = vmatpush1.bf16.msra.mxu1 %v4520_v45  ;;  %2695 = vmatpush1.bf16.msra.mxu0 %v4523_v46  ;;  %v4592_v45 = vld [vmem:[#allocation11 + $0x60] ss:$8 sps:$4 sm:$0xff]   ;;  %v4597_v46 = vld [vmem:[#allocation11 + $0x74] ss:$8 sps:$4 sm:$0xff]  }
 0x424   :  { %2614 = vmatprep.subr.bf16.mxu1 %v4528_v47  ;;  %2696 = vmatprep.subr.bf16.mxu0 %v4531_v48  ;;  %v4595_v47 = vld [vmem:[#allocation11 + $0x70] ss:$8 sps:$4 sm:$0xff]   ;;  %v4600_v48 = vld [vmem:[#allocation11 + $0x84] ss:$8 sps:$4 sm:$0xff]  }
 0x427   :  { %2615 = vmatpush1.bf16.msra.mxu1 %v4526_v49  ;;  %2697 = vmatpush1.bf16.msra.mxu0 %v4529_v50  ;;  %v4598_v49 = vld [vmem:[#allocation11 + $0x80] ss:$8 sps:$4 sm:$0xff]   ;;  %v4603_v50 = vld [vmem:[#allocation11 + $0x94] ss:$8 sps:$4 sm:$0xff]  }
 0x428   :  { %2616 = vmatprep.subr.bf16.mxu1 %v4534_v51  ;;  %2698 = vmatprep.subr.bf16.mxu0 %v4537_v52  ;;  %v4601_v51 = vld [vmem:[#allocation11 + $0x90] ss:$8 sps:$4 sm:$0xff]   ;;  %v4606_v52 = vld [vmem:[#allocation11 + $0xa4] ss:$8 sps:$4 sm:$0xff]  }
 0x42b   :  { %2617 = vmatpush1.bf16.msra.mxu1 %v4532_v53  ;;  %2699 = vmatpush1.bf16.msra.mxu0 %v4535_v54  ;;  %v4604_v53 = vld [vmem:[#allocation11 + $0xa0] ss:$8 sps:$4 sm:$0xff]   ;;  %v4609_v54 = vld [vmem:[#allocation11 + $0xb4] ss:$8 sps:$4 sm:$0xff]  }
 0x42c   :  { %2618 = vmatprep.subr.bf16.mxu1 %v4540_v55  ;;  %2700 = vmatprep.subr.bf16.mxu0 %v4543_v56  ;;  %v4607_v55 = vld [vmem:[#allocation11 + $0xb0] ss:$8 sps:$4 sm:$0xff]   ;;  %v4612_v56 = vld [vmem:[#allocation11 + $0xc4] ss:$8 sps:$4 sm:$0xff]  }
 0x42f   :  { %2619 = vmatpush1.bf16.msra.mxu1 %v4538_v57  ;;  %2701 = vmatpush1.bf16.msra.mxu0 %v4541_v58  ;;  %v4610_v57 = vld [vmem:[#allocation11 + $0xc0] ss:$8 sps:$4 sm:$0xff]   ;;  %v4615_v58 = vld [vmem:[#allocation11 + $0xd4] ss:$8 sps:$4 sm:$0xff]  }
 0x430   :  { %2620 = vmatprep.subr.bf16.mxu1 %v4546_v59  ;;  %2702 = vmatprep.subr.bf16.mxu0 %v4549_v60  ;;  %v4613_v59 = vld [vmem:[#allocation11 + $0xd0] ss:$8 sps:$4 sm:$0xff]   ;;  %v4618_v60 = vld [vmem:[#allocation11 + $0xe4] ss:$8 sps:$4 sm:$0xff]  }
 0x433   :  { %2621 = vmatpush1.bf16.msra.mxu1 %v4544_v61  ;;  %2703 = vmatpush1.bf16.msra.mxu0 %v4547_v62  ;;  %v4616_v61 = vld [vmem:[#allocation11 + $0xe0] ss:$8 sps:$4 sm:$0xff]   ;;  %v4621_v62 = vld [vmem:[#allocation11 + $0xf4] ss:$8 sps:$4 sm:$0xff]  }
 0x434   :  { %2622 = vmatprep.subr.bf16.mxu1 %v4552_v63  ;;  %2704 = vmatprep.subr.bf16.mxu0 %v4555_v0  ;;  %v4619_v63 = vld [vmem:[#allocation11 + $0xf0] ss:$8 sps:$4 sm:$0xff]   ;;  %v4624_v0 = vld [vmem:[#allocation11 + $0x104] ss:$8 sps:$4 sm:$0xff]  }
 0x437   :  { %2623 = vmatpush1.bf16.msra.mxu1 %v4550_v2  ;;  %2705 = vmatpush1.bf16.msra.mxu0 %v4553_v3  ;;  %v4670_v2 = vld [vmem:[#allocation13 + $0x40] sm:$0xff]  }
 0x438   :  { %2624 = vmatprep.subr.bf16.mxu1 %v4558_v4  ;;  %2706 = vmatprep.subr.bf16.mxu0 %v4561_v5  ;;  %v4671_v3 = vld [vmem:[#allocation13] sm:$0xff]   ;;  %v4672_v4 = vld [vmem:[#allocation13 + $0x48] sm:$0xff]  }
 0x439   :  { %v4673_v5 = vld [vmem:[#allocation13 + $0x8] sm:$0xff]  }
 0x43b   :  { %2625 = vmatpush1.bf16.msra.mxu1 %v4556_v7  ;;  %2707 = vmatpush1.bf16.msra.mxu0 %v4559_v8  ;;  %v4674_v7 = vld [vmem:[#allocation13 + $0x50] sm:$0xff]  }
 0x43c   :  { %2626 = vmatprep.subr.bf16.mxu1 %v4564_v10  ;;  %2708 = vmatprep.subr.bf16.mxu0 %v4567_v11  ;;  %v4675_v8 = vld [vmem:[#allocation13 + $0x10] sm:$0xff]   ;;  %v4676_v10 = vld [vmem:[#allocation13 + $0x58] sm:$0xff]  }
 0x43d   :  { %v1752_v18 = vpop.f32.mrb[8].mxu1  ;;  %v4677_v11 = vld [vmem:[#allocation13 + $0x18] sm:$0xff]  }
 0x43e   :  { %v1753_v19 = vadd.f32 %v1752_v18, %v1348_v12  ;;  %v1754_v20 = vpop.f32.mrb[9].mxu1  ;;  %v4678_v12 = vld [vmem:[#allocation13 + $0x60] sm:$0xff]  }
 0x43f   :  { %v1755_v21 = vadd.f32 %v1754_v20, %v1352_v13  ;;  %v1756_v22 = vpop.f32.mrb[10].mxu1  ;;  %2627 = vmatpush1.bf16.msra.mxu1 %v4562_v14  ;;  %2709 = vmatpush1.bf16.msra.mxu0 %v4565_v15  ;;  %v4679_v13 = vld [vmem:[#allocation13 + $0x20] sm:$0xff]   ;;  %v4680_v14 = vld [vmem:[#allocation13 + $0x68] sm:$0xff]  }
 0x440   :  { %v1761_v25 = vmax.f32 %v1753_v19, 0.0  ;;  %v1757_v26 = vpop.f32.mrb[11].mxu1  ;;  %2628 = vmatprep.subr.bf16.mxu1 %v4570_v16  ;;  %2710 = vmatprep.subr.bf16.mxu0 %v4573_v17  ;;  %v4681_v15 = vld [vmem:[#allocation13 + $0x28] sm:$0xff]  }
 0x441   :  { %v1762_v27 = vmax.f32 %v1755_v21, 0.0  ;;  %v5148_v16 = vld [vmem:[%s5194_s8 + $0x8] sm:$0xf] }
 0x442   :  { %v1765_v33 = vpack.c.bf16 %v1761_v25, %v1761_v25  ;;  %v1900_v17 = vrot.slane %v5148_v16, %v5109_v30  ;;  %v1904_v18 = vrot.slane %v5148_v16, %v5115_v32  ;;  %v1912_v19 = vrot.slane %v5148_v16, %v1351_v9 }
 0x443   :  { %v1766_v28 = vpack.c.bf16 %v1762_v27, %v1762_v27  ;;  %2629 = vmatpush1.bf16.msra.mxu1 %v4568_v23  ;;  %2711 = vmatpush1.bf16.msra.mxu0 %v4571_v24 }
 0x444   :  { %3125 = vmatprep.subr.bf16.mxu1 %v4576_v1  ;;  %3962 = vmatprep.subr.bf16.mxu0 %v4670_v2  ;;  %v1908_v2 = vrot.slane %v5148_v16, %v1347_v6  ;;  %v4685_v6 = vld [vmem:[#allocation13 + $0x38] sm:$0xff]  }
 0x445   :  { %2630 = vmatprep.mubr.bf16.mxu1 %v1766_v28  ;;  %2712 = vmatprep.mubr.bf16.mxu0 %v1766_v28 }
 0x446   :  { %2631 = vmatmul.mubr.bf16.vlgmr.msra.gmra.mrb[12].mxu1 %v1765_v33  ;;  %2713 = vmatmul.mubr.bf16.vlgmr.msra.gmra.mrb[4].mxu0 %v1765_v33 }
 0x447   :  { %3126 = vmatpush1.bf16.msra.mxu1 %v4574_v31  ;;  %3963 = vmatpush3.bf16.msra.mxu0 %v4671_v3  ;;  %v4666_v3 = vld [vmem:[#allocation11 + $0x1e4] ss:$8 sps:$4 sm:$0xff]  }
 0x448   :  { %3127 = vmatprep.subr.bf16.mxu1 %v4579_v34  ;;  %3964 = vmatprep.subr.bf16.mxu0 %v4672_v4  ;;  %v4664_v4 = vld [vmem:[#allocation11 + $0x1e0] ss:$8 sps:$4 sm:$0xff]  }
 0x44b   :  { %3128 = vmatpush1.bf16.msra.mxu1 %v4577_v35  ;;  %3965 = vmatpush3.bf16.msra.mxu0 %v4673_v5 }
 0x44c   :  { %3129 = vmatprep.subr.bf16.mxu1 %v4582_v36  ;;  %3966 = vmatprep.subr.bf16.mxu0 %v4674_v7  ;;  %v4669_v7 = vld [vmem:[#allocation11 + $0x1f4] ss:$8 sps:$4 sm:$0xff]  }
 0x44f   :  { %3130 = vmatpush1.bf16.msra.mxu1 %v4580_v37  ;;  %3967 = vmatpush3.bf16.msra.mxu0 %v4675_v8  ;;  %v4622_v37 = vld [vmem:[#allocation11 + $0x100] ss:$8 sps:$4 sm:$0xff]   ;;  %v4667_v8 = vld [vmem:[#allocation11 + $0x1f0] ss:$8 sps:$4 sm:$0xff]  }
 0x450   :  { %3131 = vmatprep.subr.bf16.mxu1 %v4585_v38  ;;  %3968 = vmatprep.subr.bf16.mxu0 %v4676_v10 }
 0x453   :  { %3132 = vmatpush1.bf16.msra.mxu1 %v4583_v39  ;;  %3969 = vmatpush3.bf16.msra.mxu0 %v4677_v11  ;;  %v4627_v39 = vld [vmem:[#allocation11 + $0x114] ss:$8 sps:$4 sm:$0xff]  }
 0x454   :  { %3133 = vmatprep.subr.bf16.mxu1 %v4588_v40  ;;  %3970 = vmatprep.subr.bf16.mxu0 %v4678_v12  ;;  %v4625_v40 = vld [vmem:[#allocation11 + $0x110] ss:$8 sps:$4 sm:$0xff]  }
 0x455   :  { %v4682_v12 = vld [vmem:[#allocation13 + $0x70] sm:$0xff]  }
 0x457   :  { %3134 = vmatpush1.bf16.msra.mxu1 %v4586_v41  ;;  %3971 = vmatpush3.bf16.msra.mxu0 %v4679_v13  ;;  %v4630_v41 = vld [vmem:[#allocation11 + $0x124] ss:$8 sps:$4 sm:$0xff]   ;;  %v4683_v13 = vld [vmem:[#allocation13 + $0x30] sm:$0xff]  }
 0x458   :  { %3135 = vmatprep.subr.bf16.mxu1 %v4591_v42  ;;  %3972 = vmatprep.subr.bf16.mxu0 %v4680_v14  ;;  %v4628_v42 = vld [vmem:[#allocation11 + $0x120] ss:$8 sps:$4 sm:$0xff]   ;;  %v4923_v14 = vmov 0.0  }
 0x45b   :  { %3136 = vmatpush1.bf16.msra.mxu1 %v4589_v43  ;;  %3973 = vmatpush3.bf16.msra.mxu0 %v4681_v15  ;;  %v4633_v43 = vld [vmem:[#allocation11 + $0x134] ss:$8 sps:$4 sm:$0xff]   ;;  %v2729_v15 = vld [vmem:[%s5194_s8 + $0xc] sm:$0x3] }
 0x45c   :  { %3137 = vmatprep.subr.bf16.mxu1 %v4594_v44  ;;  %v4631_v44 = vld [vmem:[#allocation11 + $0x130] ss:$8 sps:$4 sm:$0xff]   ;;  %3974 = vmatprep.subr.bf16.mxu0 %v4682_v12  ;;  %v2798_v16 = vrot.slane %v2729_v15, %v5109_v30 }
 0x45d   :  { %v4688_v30 = vld [vmem:[#allocation14 + $0x10] sm:$0xff]  }
 0x45f   :  { %3138 = vmatpush1.bf16.msra.mxu1 %v4592_v45  ;;  %v4636_v45 = vld [vmem:[#allocation11 + $0x144] ss:$8 sps:$4 sm:$0xff]   ;;  %3975 = vmatpush3.bf16.msra.mxu0 %v4683_v13 }
 0x460   :  { %3139 = vmatprep.subr.bf16.mxu1 %v4597_v46  ;;  %v4634_v46 = vld [vmem:[#allocation11 + $0x140] ss:$8 sps:$4 sm:$0xff]   ;;  %3976 = vmatprep.subr.bf16.mxu0 %v4684_v29 }
 0x463   :  { %3140 = vmatpush1.bf16.msra.mxu1 %v4595_v47  ;;  %v4639_v47 = vld [vmem:[#allocation11 + $0x154] ss:$8 sps:$4 sm:$0xff]   ;;  %3977 = vmatpush3.bf16.msra.mxu0 %v4685_v6 }
 0x464   :  { %3141 = vmatprep.subr.bf16.mxu1 %v4600_v48  ;;  %v4637_v48 = vld [vmem:[#allocation11 + $0x150] ss:$8 sps:$4 sm:$0xff]   ;;  %3993 = vmatprep.subr.bf16.mxu0 %v4923_v14 }
 0x467   :  { %3142 = vmatpush1.bf16.msra.mxu1 %v4598_v49  ;;  %v4642_v49 = vld [vmem:[#allocation11 + $0x164] ss:$8 sps:$4 sm:$0xff]  }
 0x468   :  { %3143 = vmatprep.subr.bf16.mxu1 %v4603_v50  ;;  %v4640_v50 = vld [vmem:[#allocation11 + $0x160] ss:$8 sps:$4 sm:$0xff]  }
 0x46b   :  { %3144 = vmatpush1.bf16.msra.mxu1 %v4601_v51  ;;  %v4645_v51 = vld [vmem:[#allocation11 + $0x174] ss:$8 sps:$4 sm:$0xff]  }
 0x46c   :  { %3145 = vmatprep.subr.bf16.mxu1 %v4606_v52  ;;  %v4643_v52 = vld [vmem:[#allocation11 + $0x170] ss:$8 sps:$4 sm:$0xff]  }
 0x46f   :  { %3146 = vmatpush1.bf16.msra.mxu1 %v4604_v53  ;;  %v4648_v53 = vld [vmem:[#allocation11 + $0x184] ss:$8 sps:$4 sm:$0xff]  }
 0x470   :  { %3147 = vmatprep.subr.bf16.mxu1 %v4609_v54  ;;  %v4646_v54 = vld [vmem:[#allocation11 + $0x180] ss:$8 sps:$4 sm:$0xff]  }
 0x473   :  { %3148 = vmatpush1.bf16.msra.mxu1 %v4607_v55  ;;  %v4651_v55 = vld [vmem:[#allocation11 + $0x194] ss:$8 sps:$4 sm:$0xff]  }
 0x474   :  { %3149 = vmatprep.subr.bf16.mxu1 %v4612_v56  ;;  %v4649_v56 = vld [vmem:[#allocation11 + $0x190] ss:$8 sps:$4 sm:$0xff]  }
 0x477   :  { %3150 = vmatpush1.bf16.msra.mxu1 %v4610_v57  ;;  %v4654_v57 = vld [vmem:[#allocation11 + $0x1a4] ss:$8 sps:$4 sm:$0xff]  }
 0x478   :  { %3151 = vmatprep.subr.bf16.mxu1 %v4615_v58  ;;  %v4652_v58 = vld [vmem:[#allocation11 + $0x1a0] ss:$8 sps:$4 sm:$0xff]  }
 0x47b   :  { %3152 = vmatpush1.bf16.msra.mxu1 %v4613_v59  ;;  %v4657_v59 = vld [vmem:[#allocation11 + $0x1b4] ss:$8 sps:$4 sm:$0xff]  }
 0x47c   :  { %3153 = vmatprep.subr.bf16.mxu1 %v4618_v60  ;;  %v4655_v60 = vld [vmem:[#allocation11 + $0x1b0] ss:$8 sps:$4 sm:$0xff]  }
 0x47f   :  { %3154 = vmatpush1.bf16.msra.mxu1 %v4616_v61  ;;  %v4660_v61 = vld [vmem:[#allocation11 + $0x1c4] ss:$8 sps:$4 sm:$0xff]  }
 0x480   :  { %3155 = vmatprep.subr.bf16.mxu1 %v4621_v62  ;;  %v4658_v62 = vld [vmem:[#allocation11 + $0x1c0] ss:$8 sps:$4 sm:$0xff]  }
 0x483   :  { %3156 = vmatpush1.bf16.msra.mxu1 %v4619_v63  ;;  %v4663_v63 = vld [vmem:[#allocation11 + $0x1d4] ss:$8 sps:$4 sm:$0xff]  }
 0x484   :  { %3166 = vmatprep.subr.bf16.mxu1 %v4624_v0  ;;  %v4661_v0 = vld [vmem:[#allocation11 + $0x1d0] ss:$8 sps:$4 sm:$0xff]  }
 0x519   :  { %v2632_v20 = vpop.f32.mrb[12].mxu1  ;;  %v5157_v21 = vpop.f32.mrb[4].mxu0 }
 0x51a   :  { %v4015_v22 = vadd.f32 %v2632_v20, %v1900_v17  ;;  %v2634_v23 = vpop.f32.mrb[13].mxu1  ;;  %v2716_v24 = vpop.f32.mrb[5].mxu0  ;;  %v4017_v5 = vadd.f32 %v5157_v21, %v1908_v2  ;;  %v2802_v17 = vrot.slane %v2729_v15, %v5115_v32  ;;  %v4689_v32 = vld [vmem:[#allocation14 + $0x18] sm:$0xff]  }
 0x51b   :  { %v4016_v25 = vadd.f32 %v2634_v23, %v1904_v18  ;;  %v4018_v26 = vadd.f32 %v2716_v24, %v1912_v19  ;;  %v2636_v1 = vpop.f32.mrb[14].mxu1  ;;  %v2718_v27 = vpop.f32.mrb[6].mxu0 }
 0x51c   :  { %v2721_v28 = vmax.f32 %v4015_v22, 0.0  ;;  %v2637_v31 = vpop.f32.mrb[15].mxu1  ;;  %v2719_v33 = vpop.f32.mrb[7].mxu0  ;;  %v2723_v10 = vmax.f32 %v4017_v5, 0.0  ;;  %v4686_v1 = vld [vmem:[#allocation14] sm:$0xff]  }
 0x51d   :  { %v2722_v34 = vmax.f32 %v4016_v25, 0.0  ;;  %v2724_v35 = vmax.f32 %v4018_v26, 0.0  ;;  %v4690_v31 = vld [vmem:[#allocation14 + $0x20] sm:$0xff]   ;;  %v4691_v33 = vld [vmem:[#allocation14 + $0x28] sm:$0xff]  }
 0x51e   :  { %v2725_v38 = vpack.c.bf16 %v2721_v28, %v2721_v28  ;;  %v2727_v11 = vpack.c.bf16 %v2723_v10, %v2723_v10  ;;  %v4687_v28 = vld [vmem:[#allocation14 + $0x8] sm:$0xff]  }
 0x51f   :  { %v2726_v36 = vpack.c.bf16 %v2722_v34, %v2722_v34  ;;  %v2728_v9 = vpack.c.bf16 %v2724_v35, %v2724_v35  ;;  %v4692_v34 = vld [vmem:[#allocation14 + $0x30] sm:$0xff]   ;;  %v4693_v35 = vld [vmem:[#allocation14 + $0x38] sm:$0xff]  }
 0x521   :  { %3157 = vmatprep.mubr.bf16.mxu1 %v2726_v36 }
 0x522   :  { %3158 = vmatmul.mubr.bf16.vlgmr.msra.gmra.mrb[16].mxu1 %v2725_v38 }
 0x523   :  { %3167 = vmatpush1.bf16.msra.mxu1 %v4622_v37  ;;  %3198 = vmatprep.mubr.bf16.mxu1 %v2728_v9  ;;  %v3936_v37 = vld [vmem:[%s5194_s8 + $0xe] ss:$0 sm:$0xff] }
 0x524   :  { %3168 = vmatprep.subr.bf16.mxu1 %v4627_v39 }
 0x527   :  { %3169 = vmatpush1.bf16.msra.mxu1 %v4625_v40 }
 0x528   :  { %3170 = vmatprep.subr.bf16.mxu1 %v4630_v41 }
 0x52b   :  { %3171 = vmatpush1.bf16.msra.mxu1 %v4628_v42 }
 0x52c   :  { %3172 = vmatprep.subr.bf16.mxu1 %v4633_v43 }
 0x52f   :  { %3173 = vmatpush1.bf16.msra.mxu1 %v4631_v44  ;;  %v3953_v44 = vld [vmem:[%s5194_s8 + $0xf] ss:$0 sm:$0xff]  ;;  %s4874_s8 = scalar_lea.vmem %s3517_s10, 128 }
 0x530   :  { %3174 = vmatprep.subr.bf16.mxu1 %v4636_v45  ;;  %p4875_p8 = scmp.ne.s32.totalorder %s3517_s10, %s4874_s8  ;;  %p4880_p10 = scmp.lt.s32.totalorder %s4874_s8, %s4874_s8 }
 0x532   :  { %p4881_p11 = por %p4880_p10, %p4879_p9 }
 0x533   :  { %3175 = vmatpush1.bf16.msra.mxu1 %v4634_v46 }
 0x534   :  { %3176 = vmatprep.subr.bf16.mxu1 %v4639_v47  ;;  %p4882_p12 = pnand %p4881_p11, %p4875_p8 }
 0x537   :  { %3177 = vmatpush1.bf16.msra.mxu1 %v4637_v48 }
 0x538   :  { %3178 = vmatprep.subr.bf16.mxu1 %v4642_v49 }
 0x53b   :  { %3179 = vmatpush1.bf16.msra.mxu1 %v4640_v50 }
 0x53c   :  { %3180 = vmatprep.subr.bf16.mxu1 %v4645_v51 }
 0x53f   :  { %3181 = vmatpush1.bf16.msra.mxu1 %v4643_v52 }
 0x540   :  { %3182 = vmatprep.subr.bf16.mxu1 %v4648_v53 }
 0x543   :  { %3183 = vmatpush1.bf16.msra.mxu1 %v4646_v54 }
 0x544   :  { %3184 = vmatprep.subr.bf16.mxu1 %v4651_v55 }
 0x547   :  { %3185 = vmatpush1.bf16.msra.mxu1 %v4649_v56 }
 0x548   :  { %3186 = vmatprep.subr.bf16.mxu1 %v4654_v57 }
 0x54b   :  { %3187 = vmatpush1.bf16.msra.mxu1 %v4652_v58 }
 0x54c   :  { %3188 = vmatprep.subr.bf16.mxu1 %v4657_v59 }
 0x54f   :  { %3189 = vmatpush1.bf16.msra.mxu1 %v4655_v60 }
 0x550   :  { %3190 = vmatprep.subr.bf16.mxu1 %v4660_v61 }
 0x553   :  { %3191 = vmatpush1.bf16.msra.mxu1 %v4658_v62 }
 0x554   :  { %3192 = vmatprep.subr.bf16.mxu1 %v4663_v63 }
 0x557   :  { %3193 = vmatpush1.bf16.msra.mxu1 %v4661_v0 }
 0x558   :  { %3194 = vmatprep.subr.bf16.mxu1 %v4666_v3 }
 0x55b   :  { %3195 = vmatpush1.bf16.msra.mxu1 %v4664_v4 }
 0x55c   :  { %3196 = vmatprep.subr.bf16.mxu1 %v4669_v7 }
 0x55f   :  { %3197 = vmatpush1.bf16.msra.mxu1 %v4667_v8 }
 0x562   :  { %3199 = vmatmul.mubr.bf16.vlgmr.msra.gmra.mrb[16].mxu1 %v2727_v11 }
 0x635   :  { %v3200_v18 = vpop.f32.mrb[16].mxu1 }
 0x636   :  { %v4019_v19 = vadd.f32 %v3200_v18, %v2798_v16  ;;  %v3202_v20 = vpop.f32.mrb[17].mxu1 }
 0x637   :  { %v4020_v21 = vadd.f32 %v3202_v20, %v2802_v17  ;;  %v3204_v22 = vpop.f32.mrb[18].mxu1 }
 0x638   :  { %v3207_v23 = vmax.f32 %v4019_v19, 0.0  ;;  %v3205_v24 = vpop.f32.mrb[19].mxu1 }
 0x639   :  { %v3208_v25 = vmax.f32 %v4020_v21, 0.0 }
 0x63a   :  { %v3209_v27 = vpack.c.bf16 %v3207_v23, %v3207_v23 }
 0x63b   :  { %v3210_v26 = vpack.c.bf16 %v3208_v25, %v3208_v25 }
 0x63d   :  { %3378 = vmatprep.mubr.bf16.mxu0 %v3210_v26 }
 0x63e   :  { %3379 = vmatmul.mubr.bf16.vlgmr.msra.gmra.mrb[8].mxu0 %v3209_v27 }
 0x63f   :  { %3994 = vmatpush3.bf16.msra.mxu0 %v4686_v1  ;;  %4009 = vmatprep.mubr.msk.bf16.mxu0 %vm4924_vm0, %v4923_v14 }
 0x640   :  { %3995 = vmatprep.subr.bf16.mxu0 %v4923_v14 }
 0x643   :  { %3996 = vmatpush3.bf16.msra.mxu0 %v4687_v28 }
 0x644   :  { %3997 = vmatprep.subr.bf16.mxu0 %v4923_v14 }
 0x647   :  { %3998 = vmatpush3.bf16.msra.mxu0 %v4688_v30 }
 0x648   :  { %3999 = vmatprep.subr.bf16.mxu0 %v4923_v14 }
 0x64b   :  { %4000 = vmatpush3.bf16.msra.mxu0 %v4689_v32 }
 0x64c   :  { %4001 = vmatprep.subr.bf16.mxu0 %v4923_v14 }
 0x64f   :  { %4002 = vmatpush3.bf16.msra.mxu0 %v4690_v31 }
 0x650   :  { %4003 = vmatprep.subr.bf16.mxu0 %v4923_v14 }
 0x653   :  { %4004 = vmatpush3.bf16.msra.mxu0 %v4691_v33 }
 0x654   :  { %4005 = vmatprep.subr.bf16.mxu0 %v4923_v14 }
 0x657   :  { %4006 = vmatpush3.bf16.msra.mxu0 %v4692_v34 }
 0x658   :  { %4007 = vmatprep.subr.bf16.mxu0 %v4923_v14 }
 0x65b   :  { %4008 = vmatpush3.bf16.msra.mxu0 %v4693_v35 }
 0x711   :  { %v3978_v36 = vpop.f32.mrb[8].mxu0 }
 0x712   :  { %v3979_v38 = vpop.f32.mrb[9].mxu0 }
 0x713   :  { %v3980_v39 = vadd.f32 %v3979_v38, %v3978_v36  ;;  %v3981_v9 = vpop.f32.mrb[10].mxu0 }
 0x714   :  { %v3982_v40 = vpop.f32.mrb[11].mxu0 }
 0x715   :  { %v3381_v41 = vadd.f32 %v3980_v39, %v3936_v37 }
 0x717   :  { %v3386_v42 = vmax.f32 %v3381_v41, 0.0 }
 0x719   :  { %v3387_v43 = vpack.c.bf16 %v3386_v42, %v3386_v42 }
 0x71b   :  { %4010 = vmatmul.mubr.bf16.vlgmr.msra.gmra.mrb[12].mxu0 %v3387_v43 }
 0x7ee   :  { %v3493_v45 = vpop.f32.mrb[12].mxu0 }
 0x7ef   :  { %v3494_v46 = vadd.f32 %v3953_v44, %v3493_v45  ;;  %v4011_v47 = vpop.f32.mrb[13].mxu0 }
 0x7f0   :  { %v3496_v48 = vpop.f32.mrb[14].mxu0 }
 0x7f1   :  { %3499 = vmax.xlane.f32.xlu0 %v3494_v46  ;;  %v4012_v49 = vpop.f32.mrb[15].mxu0 }
 0x87e   :  { %v3500_v50 = vpop.xlane.xlu0 %3499 }
 0x87f   :  { %v3501_v51 = vsub.f32 %v3494_v46, %v3500_v50 }
 0x881   :  { %v3502_v52 = vmul.f32 1.442695, %v3501_v51 }
 0x883   :  { %4694 = vpow2.f32 %v3502_v52 }
 0x88d   :  { %v4695_v53 = vpop.eup %4694 }
 0x88e   :  { %3504 = vadd.xlane.f32.xlu0 %v4695_v53 }
 0x91b   :  { %v3505_v54 = vpop.xlane.xlu0 %3504 }
 0x91c   :  { %4696 = vlog2.f32 %v3505_v54 }
 0x926   :  { %v4697_v55 = vpop.eup %4696 }
 0x927   :  { %v3507_v56 = vmul.f32 0.6931472, %v4697_v55 }
 0x929   :  { %v3508_v57 = vsub.f32 %v3501_v51, %v3507_v56 }
 0x92b   :  { %3509 = vst [vmem:[#allocation16] sm:$0xff] %v3508_v57 }
 0x92c   :  { %4885 = shalt.err (!%p4882_p12)
}
 0x92d   :  { %s4886_s18 = scalar_lea.hbm %s5195_s9, 128 }
 0x92e   :  { %p4887_p13 = scmp.ne.s32.totalorder %s5195_s9, %s4886_s18  ;;  %p4890_p0 = scmp.lt.u32.totalorder %s4886_s18, %s5195_s9 }
 0x930   :  { %p4892_p1 = pnand %p4890_p0, %p4887_p13 }
 0x932   :  { %4895 = shalt.err (!%p4892_p1)
}
 0x933   :  { %3519 = dma.vmem_to_hbm [thread:$0]  %s3517_s10, 128, %s5195_s9, [#allocation4]  }
 0x934   :  { %4906 = dma.done.wait [#allocation4], 128  }
 0x935   :  { %4907 = vsyncadd [#allocation4], 4294967168 }
 0x936   :  { %3523 = vsyncpa [#allocation3], 1 }
 0x937   :  { %3524 = vsyncpa [#allocation6], 1 }
 0x938   :  { %3525 = vsyncpa [#allocation9], 1 }
 0x939   :  { %3526 = vsyncpa [#allocation12], 1 }
 0x93a   :  { %3527 = vsyncpa [#allocation15], 1 }
 0x93b   :  { %3528 = vsyncpa [#allocation4], 1 }

</bundles_post_ra>
